<compile_context>
chip_gen: v7x
topology: tpu7x:2x2x1
jax: 0.10.0
libtpu: 0.0.40
codegen_flags: <defaults>
</compile_context>

<pallas_src>
import functools

import numpy as np
import jax
import jax.numpy as jnp
from jax.experimental import pallas as pl
from jax.experimental.pallas import tpu as pltpu

_HP = jax.lax.Precision.HIGHEST  # only used by the pure-JAX reference


# ------------------------------- kernel -------------------------------------

def _window_attention_kernel(x_ref, wqkv_ref, bqkv_ref, bias_ref, *rest, has_mask):
    if has_mask:
        mask_ref, wo_ref, bo_ref, o_ref = rest
    else:
        mask_ref = None
        wo_ref, bo_ref, o_ref = rest

    f32, bf16 = jnp.float32, jnp.bfloat16
    w_tile, n, c = x_ref.shape
    h = bias_ref.shape[0]
    d = c // h
    wn = w_tile * n

    # ---- fused QKV projection: one wide MXU matmul, bf16 in / f32 acc -------
    x2 = x_ref[...].reshape(wn, c).astype(bf16)              # leading-dim merge only
    qkv = jnp.dot(x2, wqkv_ref[...], preferred_element_type=f32)      # (W*N, 3C)
    qkv = qkv + bqkv_ref[...].astype(f32)                    # scale already folded into q

    # ---- split heads: static lane slices + leading-axis concat --------------
    def split_heads(col0):
        parts = [qkv[:, col0 + hh * d: col0 + (hh + 1) * d].reshape(1, w_tile, n, d)
                 for hh in range(h)]
        return jnp.concatenate(parts, axis=0).reshape(h * w_tile, n, d)

    q = split_heads(0)            # (H*W, N, D), f32, pre-scaled
    k = split_heads(c)
    v = split_heads(2 * c)

    # ---- attention scores, batched over heads*windows ------------------------
    attn = jnp.einsum('bnd,bmd->bnm', q.astype(bf16), k.astype(bf16),
                      preferred_element_type=f32)            # (H*W, N, N)
    attn = attn.reshape(h, w_tile, n, n)
    attn = attn + bias_ref[...].astype(f32)[:, None, :, :]   # one broadcast add
    if has_mask:
        attn = attn + mask_ref[...].astype(f32)[None, :, :, :]

    # ---- numerically-stable softmax (f32); divide on the EUP ----------------
    attn = attn - jnp.max(attn, axis=-1, keepdims=True)
    p = jnp.exp(attn)
    p = p * pl.reciprocal(jnp.sum(p, axis=-1, keepdims=True), approx=True)

    # ---- attn @ V -------------------------------------------------------------
    out = jnp.einsum('bnm,bmd->bnd', p.reshape(h * w_tile, n, n).astype(bf16),
                     v.astype(bf16), preferred_element_type=f32)   # (H*W, N, D)

    # ---- merge heads (lane concat) + one full-width output projection -------
    out = out.reshape(h, wn, d)
    merged = jnp.concatenate([out[hh] for hh in range(h)], axis=-1)  # (W*N, C)
    y = jnp.dot(merged.astype(bf16), wo_ref[...], preferred_element_type=f32)
    y = y + bo_ref[...].astype(f32)
    o_ref[...] = y.reshape(w_tile, n, c).astype(o_ref.dtype)


# ------------------------------ wrapper --------------------------------------

def _block_vmem_bytes(w_tile, n, c, h, has_mask, x_itemsize):
    """Rough VMEM footprint of one grid step (double-buffered I/O + temps)."""
    wn = w_tile * n
    io_blocks = 2 * 2 * wn * c * x_itemsize                    # x + out, double-buffered
    mask_block = 2 * w_tile * n * n * 4 if has_mask else 0
    weights = 2 * 2 * (c * 3 * c + c * c) + 2 * 4 * (h * n * n + 3 * c + c)
    temps = 4 * (wn * 3 * c + 3 * wn * c + 2 * h * w_tile * n * n + 2 * wn * c)
    return io_blocks + mask_block + weights + temps


def _pick_window_tile(b, n, c, h, *, nw=None, x_itemsize=4,
                      cap=64, budget_bytes=20 * 1024 * 1024):
    """Largest window tile dividing b (multiple of nw when masked) that fits a
    conservative VMEM budget; prefer tiles leaving >= 2 grid steps (v7x TCs)."""
    unit = nw if nw is not None else 1
    m_total = b // unit
    cands = [m * unit for m in range(m_total, 0, -1) if m_total % m == 0]
    fitting = [w for w in cands
               if w <= cap and _block_vmem_bytes(w, n, c, h, nw is not None,
                                                 x_itemsize) <= budget_bytes]
    if not fitting:
        return cands[-1]                  # smallest legal tile; correctness first
    multi = [w for w in fitting if b // w >= 2]
    return multi[0] if multi else fitting[0]


def window_attention(x, *, num_heads, wqkv, bqkv, wproj, bproj,
                     rel_pos_bias_table, rel_pos_index, mask=None):
    """Pallas implementation of WindowAttention.forward.

    x: (B_windows, N, C).  Weights in torch nn.Linear layout:
      wqkv (3C, C), bqkv (3C,) or None, wproj (C, C), bproj (C,) or None.
    rel_pos_bias_table: (table_size, H); rel_pos_index: (N_win, N_win) int.
    mask: (nW, N, N) or None.
    """
    b, n, c = x.shape
    h = num_heads
    d = c // h
    scale = float(d) ** -0.5

    # Fold the softmax scale into the q part of the fused QKV weight / bias.
    wqkv_scaled = jnp.concatenate([wqkv[:c] * scale, wqkv[c:]], axis=0)
    wqkv_t = jnp.asarray(wqkv_scaled.T, dtype=jnp.bfloat16)          # (C, 3C)
    if bqkv is None:
        bqkv_full = jnp.zeros((3 * c,), jnp.float32)
    else:
        bqkv_full = jnp.concatenate([bqkv[:c] * scale, bqkv[c:]]).astype(jnp.float32)
    bqkv_in = bqkv_full.reshape(1, 3 * c)

    wo = jnp.asarray(wproj.T, dtype=jnp.bfloat16)                    # (C, C)
    bo = (jnp.zeros((c,), jnp.float32) if bproj is None
          else bproj.astype(jnp.float32)).reshape(1, c)

    # Relative-position bias: tiny table gather, precomputed wrapper-side.
    idx = rel_pos_index[:n, :n].reshape(-1)
    bias = jnp.take(rel_pos_bias_table, idx, axis=0).reshape(n, n, h)
    bias = jnp.transpose(bias, (2, 0, 1)).astype(jnp.float32)        # (H, N, N)

    has_mask = mask is not None
    itemsize = jnp.dtype(x.dtype).itemsize
    if has_mask:
        nw = int(mask.shape[0])
        if b % nw != 0:
            raise ValueError("number of windows must be divisible by mask.shape[0]")
        w_tile = _pick_window_tile(b, n, c, h, nw=nw, x_itemsize=itemsize)
        mask_in = jnp.tile(mask.astype(jnp.float32), (w_tile // nw, 1, 1))
    else:
        w_tile = _pick_window_tile(b, n, c, h, nw=None, x_itemsize=itemsize)

    grid = (b // w_tile,)
    rep2 = lambda i: (0, 0)
    rep3 = lambda i: (0, 0, 0)

    in_specs = [
        pl.BlockSpec((w_tile, n, c), lambda i: (i, 0, 0)),   # x
        pl.BlockSpec((c, 3 * c), rep2),                      # fused qkv weight (resident)
        pl.BlockSpec((1, 3 * c), rep2),                      # fused qkv bias
        pl.BlockSpec((h, n, n), rep3),                       # relative-position bias
    ]
    operands = [x, wqkv_t, bqkv_in, bias]
    if has_mask:
        in_specs.append(pl.BlockSpec((w_tile, n, n), rep3))  # window mask (resident)
        operands.append(mask_in)
    in_specs += [
        pl.BlockSpec((c, c), rep2),                          # proj weight
        pl.BlockSpec((1, c), rep2),                          # proj bias
    ]
    operands += [wo, bo]

    kern = functools.partial(_window_attention_kernel, has_mask=has_mask)
    out = pl.pallas_call(
        kern,
        out_shape=jax.ShapeDtypeStruct((b, n, c), x.dtype),
        grid_spec=pltpu.PrefetchScalarGridSpec(
            num_scalar_prefetch=0,
            grid=grid,
            in_specs=in_specs,
            out_specs=pl.BlockSpec((w_tile, n, c), lambda i: (i, 0, 0)),
        ),
        compiler_params=pltpu.CompilerParams(
            dimension_semantics=("parallel",),
            vmem_limit_bytes=32 * 1024 * 1024,
        ),
    )(*operands)
    return out


# ------------------------- reference / setup helpers -------------------------

def _relative_position_index(window_size):
    """Matches the index construction in WindowAttention.__init__ (1/2/3-D)."""
    ws = tuple(int(s) for s in window_size)
    coords = np.stack(np.meshgrid(*[np.arange(s) for s in ws], indexing='ij'))
    flat = coords.reshape(len(ws), -1)
    rel = flat[:, :, None] - flat[:, None, :]
    rel = rel.transpose(1, 2, 0).astype(np.int64)
    for i, s in enumerate(ws):
        rel[:, :, i] += s - 1
    if len(ws) == 3:
        rel[:, :, 0] *= (2 * ws[1] - 1) * (2 * ws[2] - 1)
        rel[:, :, 1] *= (2 * ws[2] - 1)
    elif len(ws) == 2:
        rel[:, :, 0] *= (2 * ws[1] - 1)
    return rel.sum(-1)


def _reference_window_attention(x, wqkv, bqkv, wproj, bproj, table, rpi,
                                num_heads, mask):
    """Pure-JAX f32 transcription of the PyTorch forward."""
    b, n, c = x.shape
    h = num_heads
    d = c // h
    scale = d ** (-0.5)
    qkv = jnp.dot(x, wqkv.T, precision=_HP)
    if bqkv is not None:
        qkv = qkv + bqkv
    qkv = qkv.reshape(b, n, 3, h, d).transpose(2, 0, 3, 1, 4)
    q, k, v = qkv[0] * scale, qkv[1], qkv[2]
    attn = jnp.einsum('bhnd,bhmd->bhnm', q, k, precision=_HP)
    idx = rpi[:n, :n].reshape(-1)
    bias = jnp.take(table, idx, axis=0).reshape(n, n, h).transpose(2, 0, 1)
    attn = attn + bias[None]
    if mask is not None:
        nw = mask.shape[0]
        attn = attn.reshape(b // nw, nw, h, n, n) + mask[None, :, None, :, :]
        attn = attn.reshape(b, h, n, n)
    attn = jax.nn.softmax(attn, axis=-1)
    out = jnp.einsum('bhnm,bhmd->bhnd', attn, v, precision=_HP)
    out = jnp.transpose(out, (0, 2, 1, 3)).reshape(b, n, c)
    y = jnp.dot(out, wproj.T, precision=_HP)
    if bproj is not None:
        y = y + bproj
    return y


if __name__ == "__main__":
    # Small config: 2-D window (4, 4) -> N = 16 tokens, C = 32, 4 heads,
    # 4 windows per image, 2 images -> 8 windows total.
    dim, num_heads = 32, 4
    window_size = (4, 4)
    n = window_size[0] * window_size[1]
    nw = 4
    b = 2 * nw

    key = jax.random.PRNGKey(0)
    keys = jax.random.split(key, 7)
    x = jax.random.normal(keys[0], (b, n, dim), dtype=jnp.float32)
    wqkv = jax.random.normal(keys[1], (3 * dim, dim), jnp.float32) * 0.05
    bqkv = jax.random.normal(keys[2], (3 * dim,), jnp.float32) * 0.02
    wproj = jax.random.normal(keys[3], (dim, dim), jnp.float32) * 0.05
    bproj = jax.random.normal(keys[4], (dim,), jnp.float32) * 0.02
    table_size = (2 * window_size[0] - 1) * (2 * window_size[1] - 1)
    table = jax.random.normal(keys[5], (table_size, num_heads), jnp.float32) * 0.02
    mask = jnp.where(jax.random.uniform(keys[6], (nw, n, n)) > 0.5,
                     0.0, -100.0).astype(jnp.float32)

    rpi = jnp.asarray(_relative_position_index(window_size), dtype=jnp.int32)

    # Masked path (shifted-window case).
    y_masked = window_attention(
        x, num_heads=num_heads, wqkv=wqkv, bqkv=bqkv, wproj=wproj, bproj=bproj,
        rel_pos_bias_table=table, rel_pos_index=rpi, mask=mask)
    y_masked = jax.block_until_ready(y_masked)

    # No-mask path (specialized kernel variant).
    y_nomask = window_attention(
        x, num_heads=num_heads, wqkv=wqkv, bqkv=bqkv, wproj=wproj, bproj=bproj,
        rel_pos_bias_table=table, rel_pos_index=rpi, mask=None)
    y_nomask = jax.block_until_ready(y_nomask)

    ref_masked = _reference_window_attention(
        x, wqkv, bqkv, wproj, bproj, table, rpi, num_heads, mask)
    ref_nomask = _reference_window_attention(
        x, wqkv, bqkv, wproj, bproj, table, rpi, num_heads, None)

    assert y_masked.shape == (b, n, dim) and y_masked.dtype == x.dtype
    assert y_nomask.shape == (b, n, dim) and y_nomask.dtype == x.dtype
    # bf16 MXU operands + approximate reciprocal -> bf16-level tolerances
    # against the f32 HIGHEST reference.
    assert jnp.allclose(y_masked, ref_masked, atol=2e-2, rtol=2e-2)
    assert jnp.allclose(y_nomask, ref_nomask, atol=2e-2, rtol=2e-2)

    print("KERNEL_OK")
</pallas_src>

<mosaic_0001>
module attributes {stable_mosaic.version = 11 : i64} {
  func.func @_window_attention_kernel(%arg0: i32, %arg1: memref<4x16x32xf32, #tpu.memory_space<vmem>>, %arg2: memref<32x96xbf16, #tpu.memory_space<vmem>>, %arg3: memref<1x96xf32, #tpu.memory_space<vmem>>, %arg4: memref<4x16x16xf32, #tpu.memory_space<vmem>>, %arg5: memref<4x16x16xf32, #tpu.memory_space<vmem>>, %arg6: memref<32x32xbf16, #tpu.memory_space<vmem>>, %arg7: memref<1x32xf32, #tpu.memory_space<vmem>>, %arg8: memref<4x16x32xf32, #tpu.memory_space<vmem>>) attributes {dimension_semantics = [#tpu.dimension_semantics<parallel>], iteration_bounds = array<i64: 2>, scalar_prefetch = 0 : i64, scratch_operands = 0 : i64, tpu.core_type = #tpu.core_type<tc>, window_params = [{transform_indices = @transform_0, window_bounds = array<i64: 4, 16, 32>}, {pipeline_mode = #tpu.pipeline_mode<synchronous>, transform_indices = @transform_1, window_bounds = array<i64: 32, 96>}, {pipeline_mode = #tpu.pipeline_mode<synchronous>, transform_indices = @transform_2, window_bounds = array<i64: 1, 96>}, {pipeline_mode = #tpu.pipeline_mode<synchronous>, transform_indices = @transform_3, window_bounds = array<i64: 4, 16, 16>}, {pipeline_mode = #tpu.pipeline_mode<synchronous>, transform_indices = @transform_4, window_bounds = array<i64: 4, 16, 16>}, {pipeline_mode = #tpu.pipeline_mode<synchronous>, transform_indices = @transform_5, window_bounds = array<i64: 32, 32>}, {pipeline_mode = #tpu.pipeline_mode<synchronous>, transform_indices = @transform_6, window_bounds = array<i64: 1, 32>}, {transform_indices = @transform_7, window_bounds = array<i64: 4, 16, 32>}]} {
    %c0 = arith.constant 0 : index
    %c0_0 = arith.constant 0 : index
    %c0_1 = arith.constant 0 : index
    %0 = vector.load %arg1[%c0, %c0_0, %c0_1] : memref<4x16x32xf32, #tpu.memory_space<vmem>>, vector<4x16x32xf32>
    %1 = vector.shape_cast %0 : vector<4x16x32xf32> to vector<64x32xf32>
    %2 = arith.truncf %1 : vector<64x32xf32> to vector<64x32xbf16>
    %c0_2 = arith.constant 0 : index
    %c0_3 = arith.constant 0 : index
    %3 = vector.load %arg2[%c0_2, %c0_3] : memref<32x96xbf16, #tpu.memory_space<vmem>>, vector<32x96xbf16>
    %cst = arith.constant dense<0.000000e+00> : vector<64x96xf32>
    %4 = tpu.matmul %2, %3, %cst {dimension_numbers = #tpu.dot_dimension_numbers<[1], [0], [0], [1], [0, 0, 1, 1], [], []>} : vector<64x32xbf16>, vector<32x96xbf16>, vector<64x96xf32> -> vector<64x96xf32>
    %c0_4 = arith.constant 0 : index
    %c0_5 = arith.constant 0 : index
    %5 = vector.load %arg3[%c0_4, %c0_5] : memref<1x96xf32, #tpu.memory_space<vmem>>, vector<1x96xf32>
    %6 = vector.broadcast %5 : vector<1x96xf32> to vector<64x96xf32>
    %7 = arith.addf %4, %6 : vector<64x96xf32>
    %8 = vector.extract_strided_slice %7 {offsets = [0, 0], sizes = [64, 8], strides = [1, 1]} : vector<64x96xf32> to vector<64x8xf32>
    %9 = vector.shape_cast %8 : vector<64x8xf32> to vector<1x4x16x8xf32>
    %10 = vector.extract_strided_slice %7 {offsets = [0, 8], sizes = [64, 8], strides = [1, 1]} : vector<64x96xf32> to vector<64x8xf32>
    %11 = vector.shape_cast %10 : vector<64x8xf32> to vector<1x4x16x8xf32>
    %12 = vector.extract_strided_slice %7 {offsets = [0, 16], sizes = [64, 8], strides = [1, 1]} : vector<64x96xf32> to vector<64x8xf32>
    %13 = vector.shape_cast %12 : vector<64x8xf32> to vector<1x4x16x8xf32>
    %14 = vector.extract_strided_slice %7 {offsets = [0, 24], sizes = [64, 8], strides = [1, 1]} : vector<64x96xf32> to vector<64x8xf32>
    %15 = vector.shape_cast %14 : vector<64x8xf32> to vector<1x4x16x8xf32>
    %16 = tpu.concatenate %9, %11, %13, %15 in 0 : vector<1x4x16x8xf32>, vector<1x4x16x8xf32>, vector<1x4x16x8xf32>, vector<1x4x16x8xf32> -> vector<4x4x16x8xf32>
    %17 = vector.shape_cast %16 : vector<4x4x16x8xf32> to vector<16x16x8xf32>
    %18 = vector.extract_strided_slice %7 {offsets = [0, 32], sizes = [64, 8], strides = [1, 1]} : vector<64x96xf32> to vector<64x8xf32>
    %19 = vector.shape_cast %18 : vector<64x8xf32> to vector<1x4x16x8xf32>
    %20 = vector.extract_strided_slice %7 {offsets = [0, 40], sizes = [64, 8], strides = [1, 1]} : vector<64x96xf32> to vector<64x8xf32>
    %21 = vector.shape_cast %20 : vector<64x8xf32> to vector<1x4x16x8xf32>
    %22 = vector.extract_strided_slice %7 {offsets = [0, 48], sizes = [64, 8], strides = [1, 1]} : vector<64x96xf32> to vector<64x8xf32>
    %23 = vector.shape_cast %22 : vector<64x8xf32> to vector<1x4x16x8xf32>
    %24 = vector.extract_strided_slice %7 {offsets = [0, 56], sizes = [64, 8], strides = [1, 1]} : vector<64x96xf32> to vector<64x8xf32>
    %25 = vector.shape_cast %24 : vector<64x8xf32> to vector<1x4x16x8xf32>
    %26 = tpu.concatenate %19, %21, %23, %25 in 0 : vector<1x4x16x8xf32>, vector<1x4x16x8xf32>, vector<1x4x16x8xf32>, vector<1x4x16x8xf32> -> vector<4x4x16x8xf32>
    %27 = vector.shape_cast %26 : vector<4x4x16x8xf32> to vector<16x16x8xf32>
    %28 = vector.extract_strided_slice %7 {offsets = [0, 64], sizes = [64, 8], strides = [1, 1]} : vector<64x96xf32> to vector<64x8xf32>
    %29 = vector.shape_cast %28 : vector<64x8xf32> to vector<1x4x16x8xf32>
    %30 = vector.extract_strided_slice %7 {offsets = [0, 72], sizes = [64, 8], strides = [1, 1]} : vector<64x96xf32> to vector<64x8xf32>
    %31 = vector.shape_cast %30 : vector<64x8xf32> to vector<1x4x16x8xf32>
    %32 = vector.extract_strided_slice %7 {offsets = [0, 80], sizes = [64, 8], strides = [1, 1]} : vector<64x96xf32> to vector<64x8xf32>
    %33 = vector.shape_cast %32 : vector<64x8xf32> to vector<1x4x16x8xf32>
    %34 = vector.extract_strided_slice %7 {offsets = [0, 88], sizes = [64, 8], strides = [1, 1]} : vector<64x96xf32> to vector<64x8xf32>
    %35 = vector.shape_cast %34 : vector<64x8xf32> to vector<1x4x16x8xf32>
    %36 = tpu.concatenate %29, %31, %33, %35 in 0 : vector<1x4x16x8xf32>, vector<1x4x16x8xf32>, vector<1x4x16x8xf32>, vector<1x4x16x8xf32> -> vector<4x4x16x8xf32>
    %37 = vector.shape_cast %36 : vector<4x4x16x8xf32> to vector<16x16x8xf32>
    %38 = arith.truncf %17 : vector<16x16x8xf32> to vector<16x16x8xbf16>
    %39 = arith.truncf %27 : vector<16x16x8xf32> to vector<16x16x8xbf16>
    "tpu.trace_start"() <{level = 10 : i32, message = "bnd,bmd->bnm"}> : () -> ()
    %cst_6 = arith.constant dense<0.000000e+00> : vector<16x16x16xf32>
    %40 = tpu.matmul %38, %39, %cst_6 {dimension_numbers = #tpu.dot_dimension_numbers<[2], [2], [1], [1], [0, 0, 0, 1, 1, 1], [0], [0]>} : vector<16x16x8xbf16>, vector<16x16x8xbf16>, vector<16x16x16xf32> -> vector<16x16x16xf32>
    "tpu.trace_stop"() : () -> ()
    %41 = vector.shape_cast %40 : vector<16x16x16xf32> to vector<4x4x16x16xf32>
    %c0_7 = arith.constant 0 : index
    %c0_8 = arith.constant 0 : index
    %c0_9 = arith.constant 0 : index
    %42 = vector.load %arg4[%c0_7, %c0_8, %c0_9] : memref<4x16x16xf32, #tpu.memory_space<vmem>>, vector<4x16x16xf32>
    %43 = vector.shape_cast %42 : vector<4x16x16xf32> to vector<4x1x16x16xf32>
    %44 = vector.broadcast %43 : vector<4x1x16x16xf32> to vector<4x4x16x16xf32>
    %45 = arith.addf %41, %44 : vector<4x4x16x16xf32>
    %c0_10 = arith.constant 0 : index
    %c0_11 = arith.constant 0 : index
    %c0_12 = arith.constant 0 : index
    %46 = vector.load %arg5[%c0_10, %c0_11, %c0_12] : memref<4x16x16xf32, #tpu.memory_space<vmem>>, vector<4x16x16xf32>
    %47 = vector.shape_cast %46 : vector<4x16x16xf32> to vector<1x4x16x16xf32>
    %48 = vector.broadcast %47 : vector<1x4x16x16xf32> to vector<4x4x16x16xf32>
    %49 = arith.addf %45, %48 : vector<4x4x16x16xf32>
    %cst_13 = arith.constant dense<0xFF800000> : vector<4x4x16xf32>
    %50 = vector.multi_reduction <maximumf>, %49, %cst_13 [3] : vector<4x4x16x16xf32> to vector<4x4x16xf32>
    %51 = vector.shape_cast %50 : vector<4x4x16xf32> to vector<4x4x16x1xf32>
    %52 = vector.broadcast %51 : vector<4x4x16x1xf32> to vector<4x4x16x16xf32>
    %53 = arith.subf %49, %52 : vector<4x4x16x16xf32>
    %54 = math.exp %53 : vector<4x4x16x16xf32>
    %cst_14 = arith.constant dense<0.000000e+00> : vector<4x4x16xf32>
    %55 = vector.multi_reduction <add>, %54, %cst_14 [3] : vector<4x4x16x16xf32> to vector<4x4x16xf32>
    %56 = vector.shape_cast %55 : vector<4x4x16xf32> to vector<4x4x16x1xf32>
    %57 = tpu.reciprocal %56 {approx = true} : vector<4x4x16x1xf32> -> vector<4x4x16x1xf32>
    %58 = vector.broadcast %57 : vector<4x4x16x1xf32> to vector<4x4x16x16xf32>
    %59 = arith.mulf %54, %58 : vector<4x4x16x16xf32>
    %60 = vector.shape_cast %59 : vector<4x4x16x16xf32> to vector<16x16x16xf32>
    %61 = arith.truncf %60 : vector<16x16x16xf32> to vector<16x16x16xbf16>
    %62 = arith.truncf %37 : vector<16x16x8xf32> to vector<16x16x8xbf16>
    "tpu.trace_start"() <{level = 10 : i32, message = "bnm,bmd->bnd"}> : () -> ()
    %cst_15 = arith.constant dense<0.000000e+00> : vector<16x16x8xf32>
    %63 = tpu.matmul %61, %62, %cst_15 {dimension_numbers = #tpu.dot_dimension_numbers<[2], [1], [1], [2], [0, 0, 0, 1, 1, 2], [0], [0]>} : vector<16x16x16xbf16>, vector<16x16x8xbf16>, vector<16x16x8xf32> -> vector<16x16x8xf32>
    "tpu.trace_stop"() : () -> ()
    %64 = vector.shape_cast %63 : vector<16x16x8xf32> to vector<4x64x8xf32>
    %65 = vector.extract_strided_slice %64 {offsets = [0, 0, 0], sizes = [1, 64, 8], strides = [1, 1, 1]} : vector<4x64x8xf32> to vector<1x64x8xf32>
    %66 = vector.shape_cast %65 : vector<1x64x8xf32> to vector<64x8xf32>
    %67 = vector.extract_strided_slice %64 {offsets = [1, 0, 0], sizes = [1, 64, 8], strides = [1, 1, 1]} : vector<4x64x8xf32> to vector<1x64x8xf32>
    %68 = vector.shape_cast %67 : vector<1x64x8xf32> to vector<64x8xf32>
    %69 = vector.extract_strided_slice %64 {offsets = [2, 0, 0], sizes = [1, 64, 8], strides = [1, 1, 1]} : vector<4x64x8xf32> to vector<1x64x8xf32>
    %70 = vector.shape_cast %69 : vector<1x64x8xf32> to vector<64x8xf32>
    %71 = vector.extract_strided_slice %64 {offsets = [3, 0, 0], sizes = [1, 64, 8], strides = [1, 1, 1]} : vector<4x64x8xf32> to vector<1x64x8xf32>
    %72 = vector.shape_cast %71 : vector<1x64x8xf32> to vector<64x8xf32>
    %73 = tpu.concatenate %66, %68, %70, %72 in 1 : vector<64x8xf32>, vector<64x8xf32>, vector<64x8xf32>, vector<64x8xf32> -> vector<64x32xf32>
    %74 = arith.truncf %73 : vector<64x32xf32> to vector<64x32xbf16>
    %c0_16 = arith.constant 0 : index
    %c0_17 = arith.constant 0 : index
    %75 = vector.load %arg6[%c0_16, %c0_17] : memref<32x32xbf16, #tpu.memory_space<vmem>>, vector<32x32xbf16>
    %cst_18 = arith.constant dense<0.000000e+00> : vector<64x32xf32>
    %76 = tpu.matmul %74, %75, %cst_18 {dimension_numbers = #tpu.dot_dimension_numbers<[1], [0], [0], [1], [0, 0, 1, 1], [], []>} : vector<64x32xbf16>, vector<32x32xbf16>, vector<64x32xf32> -> vector<64x32xf32>
    %c0_19 = arith.constant 0 : index
    %c0_20 = arith.constant 0 : index
    %77 = vector.load %arg7[%c0_19, %c0_20] : memref<1x32xf32, #tpu.memory_space<vmem>>, vector<1x32xf32>
    %78 = vector.broadcast %77 : vector<1x32xf32> to vector<64x32xf32>
    %79 = arith.addf %76, %78 : vector<64x32xf32>
    %80 = vector.shape_cast %79 : vector<64x32xf32> to vector<4x16x32xf32>
    %c0_21 = arith.constant 0 : index
    %c0_22 = arith.constant 0 : index
    %c0_23 = arith.constant 0 : index
    %81 = vector.load %arg8[%c0_21, %c0_22, %c0_23] : memref<4x16x32xf32, #tpu.memory_space<vmem>>, vector<4x16x32xf32>
    tpu.vector_store %arg8[%c0_21, %c0_22, %c0_23], %80 {strides = array<i32>} : memref<4x16x32xf32, #tpu.memory_space<vmem>>, vector<4x16x32xf32>,
    return
  }
  func.func @transform_0(%arg0: i32) -> (i32, i32, i32) {
    %c0_i32 = arith.constant 0 : i32
    %c0_i32_0 = arith.constant 0 : i32
    %c0_i32_1 = arith.constant 0 : i32
    return %arg0, %c0_i32, %c0_i32_0 : i32, i32, i32
  }
  func.func @transform_1(%arg0: i32) -> (i32, i32) {
    %c0_i32 = arith.constant 0 : i32
    %c0_i32_0 = arith.constant 0 : i32
    %c0_i32_1 = arith.constant 0 : i32
    return %c0_i32, %c0_i32_0 : i32, i32
  }
  func.func @transform_2(%arg0: i32) -> (i32, i32) {
    %c0_i32 = arith.constant 0 : i32
    %c0_i32_0 = arith.constant 0 : i32
    %c0_i32_1 = arith.constant 0 : i32
    return %c0_i32, %c0_i32_0 : i32, i32
  }
  func.func @transform_3(%arg0: i32) -> (i32, i32, i32) {
    %c0_i32 = arith.constant 0 : i32
    %c0_i32_0 = arith.constant 0 : i32
    %c0_i32_1 = arith.constant 0 : i32
    %c0_i32_2 = arith.constant 0 : i32
    return %c0_i32, %c0_i32_0, %c0_i32_1 : i32, i32, i32
  }
  func.func @transform_4(%arg0: i32) -> (i32, i32, i32) {
    %c0_i32 = arith.constant 0 : i32
    %c0_i32_0 = arith.constant 0 : i32
    %c0_i32_1 = arith.constant 0 : i32
    %c0_i32_2 = arith.constant 0 : i32
    return %c0_i32, %c0_i32_0, %c0_i32_1 : i32, i32, i32
  }
  func.func @transform_5(%arg0: i32) -> (i32, i32) {
    %c0_i32 = arith.constant 0 : i32
    %c0_i32_0 = arith.constant 0 : i32
    %c0_i32_1 = arith.constant 0 : i32
    return %c0_i32, %c0_i32_0 : i32, i32
  }
  func.func @transform_6(%arg0: i32) -> (i32, i32) {
    %c0_i32 = arith.constant 0 : i32
    %c0_i32_0 = arith.constant 0 : i32
    %c0_i32_1 = arith.constant 0 : i32
    return %c0_i32, %c0_i32_0 : i32, i32
  }
  func.func @transform_7(%arg0: i32) -> (i32, i32, i32) {
    %c0_i32 = arith.constant 0 : i32
    %c0_i32_0 = arith.constant 0 : i32
    %c0_i32_1 = arith.constant 0 : i32
    return %arg0, %c0_i32, %c0_i32_0 : i32, i32, i32
  }
}

</mosaic_0001>

<bundles_post_ra>
// kernel: tpu_custom_call.1
= control target key start
LH: loop header
LB: loop body
LE: loop exit
PB: predicated region body
PF: predicated region fallthrough
CT: control target
= control target key end

     0   :  { %s4882_s0 = inlined_call_operand.hbm [shape: f32[8,16,32], index: 0, kind: input, shape index: {}]   ;;  %s4883_s1 = inlined_call_operand.hbm [shape: bf16[32,96], index: 1, kind: input, shape index: {}]   ;;  %s4884_s2 = inlined_call_operand.vmem [shape: f32[1,96], index: 2, kind: input, shape index: {}]   ;;  %s4885_s3 = inlined_call_operand.hbm [shape: f32[4,16,16], index: 3, kind: input, shape index: {}]   ;;  %s4886_s4 = inlined_call_operand.hbm [shape: f32[4,16,16], index: 4, kind: input, shape index: {}]   ;;  %s4887_s5 = inlined_call_operand.vmem [shape: bf16[32,32], index: 5, kind: input, shape index: {}]   ;;  %s4888_s6 = inlined_call_operand.vmem [shape: f32[1,32], index: 6, kind: input, shape index: {}]   ;;  %s4889_s7 = inlined_call_operand.hbm [shape: f32[8,16,32], index: 7, kind: output, shape index: {}]  }
   0x1   :  { %4894 = sst [smem:[#allocation16_spill]] %s4883_s1 }
   0x2   :  { %12 = vsyncpa [#allocation3], 0 }
   0x3   :  { %14 = vsyncpa [#allocation3 + $0x1], 0 }
   0x4   :  { %15 = vsyncpa [#allocation6], 0 }
   0x5   :  { %16 = vsyncpa [#allocation9], 0 }
   0x6   :  { %17 = vsyncpa [#allocation4], 0 }
   0x7   :  { %19 = vsyncpa [#allocation4 + $0x1], 0  ;;  %s3868_s24 = smov 0   ;;  %s3870_s25 = smov 0  }
   0x8   :  { %s3872_s26 = smov 0   ;;  %s3874_s27 = smov 0  }
   0x9 LB: > { %s3889_s28 = sadd.s32 4294967295, %s3806_s27   ;;  %s2906_s29 = sadd.s32 4294967294, %s3806_s27   ;;  %s3806_s27 = sphi %s3874_s27, %s4917_s27   ;;  %s3802_s26 = sphi %s3872_s26, %s4916_s26   ;;  %s3798_s25 = sphi %s3870_s25, %s4915_s25   ;;  %s3794_s24 = sphi %s3868_s24, %s4914_s24  }
   0xa   : > { %p45_p0 = scmp.ne.s32.totalorder %s3798_s25, %s3794_s24  ;;  %p4890_p1 = scmp.eq.s32.totalorder %s3889_s28, 0 }
   0xb   : > { %p201_p3 = scmp.eq.s32.totalorder %s2906_s29, 1  ;;  %p2907_p5 = scmp.ge.s32.totalorder %s3806_s27, 1 }
   0xc   : > { %p3898_p4 = por %p4890_p1, %p45_p0  ;;  %p208_p7 = scmp.lt.s32.totalorder %s3806_s27, 3 }
   0xd   : > { %p3903_p6 = por %p201_p3, %p45_p0  ;;  %s3808_s10 = smov [#allocation5]  }
   0xe   : > { %s4895_s30 = scalar_select %p3898_p4, 1, 0 }
   0xf   : > { %s4896_s8 = scalar_select %p3903_p6, 1, 0 }
  0x10   : > { %p3908_p8 = pnand %p2907_p5, %p208_p7  ;;  %s220_s11 = sshll.u32 %s3808_s10, 4  ;;  %s3912_s11 = int_to_ptr.vmem [resolvable:$true] %s220_s11 }
  0x11   : > { %4897 = sst [smem:[#allocation15_spill]] %s4896_s8  ;;  %s3809_s13 = smov [#allocation7]  }
  0x12   : > { %s4898_s9 = scalar_select %p3908_p8, 1, 0 }
  0x13   : > { %p3290_p9 = pneg %p3908_p8  ;;  %s236_s14 = sshll.u32 %s3809_s13, 4  ;;  %s3923_s14 = int_to_ptr.vmem [resolvable:$true] %s236_s14 }
  0x14   : > { %s4900_s1 = sld [smem:[#allocation16_spill]] }
  0x15   : > { %p3919_p11 = pnand %p3290_p9, %p4890_p1 }
  0x17   : > { %p3933_p13 = pneg %p3919_p11 }
  0x1a   : > { %s3618_s17 = scalar_lea.hbm %s4900_s1, 256 }
  0x1b   : > { %p3619_p12 = scmp.ne.s32.totalorder %s4900_s1, %s3618_s17  ;;  %p3625_p5 = scmp.lt.u32.totalorder %s3618_s17, %s4900_s1 }
  0x1d   : > { %p3621_p0 = pnand %p3933_p13, %p3619_p12 }
  0x1f   : > { %p3622_p3 = pneg %p3621_p0 }
  0x21   : > { %p3627_p7 = pnand %p3625_p5, %p3622_p3 }
  0x23   : > { %3630 = shalt.err (!%p3627_p7)
}
  0x24   : > { %s3631_s23 = scalar_lea.vmem %s3912_s11, 256  ;;  %p3639_p2 = scmp.lt.s32.totalorder %s3912_s11, %s3912_s11 }
  0x25   : > { %p3632_p9 = scmp.ne.s32.totalorder %s3912_s11, %s3631_s23  ;;  %p3640_p6 = scmp.lt.s32.totalorder %s3631_s23, %s3631_s23 }
  0x27   : > { %p3634_p10 = pnand %p3632_p9, %p3933_p13  ;;  %p3641_p12 = por %p3640_p6, %p3639_p2 }
  0x29   : > { %p3635_p1 = pneg %p3634_p10 }
  0x2b   : > { %p3642_p0 = pnand %p3641_p12, %p3635_p1 }
  0x2d   : > { %3645 = shalt.err (!%p3642_p0)
}
  0x2e   : > { %s3810_s29 = smov 64   ;;  %s3811_s10 = smov 4  }
  0x2f   : > { %3293 = dma.hbm_to_vmem [thread:$0]  (!%p3919_p11), %s4900_s1, 256, %s3912_s11, [#allocation6], %s3810_s29, %s3810_s29, %s3811_s10  }
  0x30   : > { %s3646_s18 = scalar_lea.hbm %s4885_s3, 1024 }
  0x31   : > { %p3647_p2 = scmp.ne.s32.totalorder %s4885_s3, %s3646_s18  ;;  %p3653_p10 = scmp.lt.u32.totalorder %s3646_s18, %s4885_s3 }
  0x33   : > { %p3649_p1 = pnand %p3647_p2, %p3933_p13 }
  0x35   : > { %p3650_p6 = pneg %p3649_p1 }
  0x37   : > { %p3655_p3 = pnand %p3653_p10, %p3650_p6 }
  0x39   : > { %3658 = shalt.err (!%p3655_p3)
}
  0x3a   : > { %s3659_s11 = scalar_lea.vmem %s3923_s14, 1024  ;;  %p3667_p12 = scmp.lt.s32.totalorder %s3923_s14, %s3923_s14 }
  0x3b   : > { %p3660_p5 = scmp.ne.s32.totalorder %s3923_s14, %s3659_s11  ;;  %p3668_p0 = scmp.lt.s32.totalorder %s3659_s11, %s3659_s11 }
  0x3d   : > { %p3662_p7 = pnand %p3660_p5, %p3933_p13  ;;  %p3669_p2 = por %p3668_p0, %p3667_p12 }
  0x3f   : > { %p3663_p9 = pneg %p3662_p7 }
  0x41   : > { %p3670_p1 = pnand %p3669_p2, %p3663_p9 }
  0x43   : > { %3673 = shalt.err (!%p3670_p1)
}
  0x44   : > { %s3812_s29 = smov 128   ;;  %s3813_s10 = smov 8  }
  0x45   : > { %3296 = dma.hbm_to_vmem [thread:$0]  (!%p3919_p11), %s4885_s3, 1024, %s3923_s14, [#allocation6], %s3812_s29, %s3812_s29, %s3813_s10  }
  0x46   : > { %s3814_s16 = smov [#allocation8]   ;;  %s3981_s18 = sadd.s32 1, %s3806_s27  }
  0x47   : > { %s249_s17 = sshll.u32 %s3814_s16, 4  ;;  %s3674_s22 = scalar_lea.hbm %s4886_s4, 1024  ;;  %s250_s17 = int_to_ptr.vmem [resolvable:$true] %s249_s17 }
  0x48   : > { %p3675_p6 = scmp.ne.s32.totalorder %s4886_s4, %s3674_s22  ;;  %p3681_p5 = scmp.lt.u32.totalorder %s3674_s22, %s4886_s4 }
  0x4a   : > { %p3677_p10 = pnand %p3675_p6, %p3933_p13 }
  0x4c   : > { %p3678_p3 = pneg %p3677_p10 }
  0x4e   : > { %p3683_p7 = pnand %p3681_p5, %p3678_p3 }
  0x50   : > { %3686 = shalt.err (!%p3683_p7)
}
  0x51   : > { %s3687_s14 = scalar_lea.vmem %s250_s17, 1024  ;;  %p3695_p2 = scmp.lt.s32.totalorder %s250_s17, %s250_s17 }
  0x52   : > { %p3688_p9 = scmp.ne.s32.totalorder %s250_s17, %s3687_s14  ;;  %p3696_p1 = scmp.lt.s32.totalorder %s3687_s14, %s3687_s14 }
  0x54   : > { %p3690_p12 = pnand %p3688_p9, %p3933_p13  ;;  %p3697_p4 = por %p3696_p1, %p3695_p2 }
  0x56   : > { %p3691_p0 = pneg %p3690_p12 }
  0x58   : > { %p3698_p8 = pnand %p3697_p4, %p3691_p0 }
  0x5a   : > { %3701 = shalt.err (!%p3698_p8)
}
  0x5b   : > { %3299 = dma.hbm_to_vmem [thread:$0]  (!%p3919_p11), %s4886_s4, 1024, %s250_s17, [#allocation9], %s3812_s29, %s3812_s29, %s3813_s10  }
  0x5c   : > { %s29_s20 = ssub.s32 %s3806_s27, %s3981_s18  ;;  %s32_s12 = sadd.s32 1, %s3802_s26 }
  0x5d   : > { %p30_p4 = scmp.eq.s32.totalorder %s29_s20, 0  ;;  %p39_p8 = scmp.ne.s32.totalorder %s3802_s26, %s3798_s25 }
  0x5e   : > { %p40_p13 = scmp.eq.s32.totalorder %s3806_s27, 0  ;;  %p3311_p6 = scmp.lt.s32.totalorder %s3806_s27, 2 }
  0x5f   : > { %s4012_s13 = scalar_select %p30_p4, %s3802_s26, %s32_s12  }
  0x60   : > { %p41_p10 = por %p40_p13, %p39_p8  ;;  %p4902_p3 = scmp.eq.s32.totalorder %s3889_s28, 1 }
  0x61   : > { %s269_s16 = sand.u32 1, %s3802_s26   ;;  %s2975_s19 = sshll.u32 %s3806_s27, 10 }
  0x62   : > { %p4016_p5 = por %p4902_p3, %p39_p8  ;;  %s2912_s21 = sshll.u32 %s269_s16, 6 }
  0x63   : > { %s4025_s17 = scalar_lea.hbm %s4882_s0, %s2975_s19  ;;  %s273_s11 = scalar_lea.vmem [#allocation2], %s2912_s21 }
  0x64   : > { %s281_s14 = sshll.u32 %s273_s11, 4  ;;  %p4027_p11 = pnand %p3311_p6, %p41_p10  ;;  %s4031_s14 = int_to_ptr.vmem [resolvable:$true] %s281_s14 }
  0x65   : > { %s4033_s8 = scalar_lea.sflag [#allocation3], %s269_s16  ;;  %s3702_s20 = scalar_lea.hbm %s4025_s17, 1024 }
  0x66   : > { %p3703_p7 = scmp.ne.s32.totalorder %s4025_s17, %s3702_s20  ;;  %p3704_p9 = pneg %p4027_p11 }
  0x67   : > { %s3707_s21 = scalar_lea.hbm %s4882_s0, 2048  ;;  %p3708_p2 = scmp.lt.u32.totalorder %s4025_s17, %s4882_s0 }
  0x68   : > { %p3705_p12 = pnand %p3704_p9, %p3703_p7  ;;  %p3709_p1 = scmp.lt.u32.totalorder %s3707_s21, %s3702_s20 }
  0x69   : > { %p3711_p8 = scmp.lt.u32.totalorder %s3702_s20, %s4025_s17 }
  0x6a   : > { %p3706_p0 = pneg %p3705_p12  ;;  %p3710_p4 = por %p3709_p1, %p3708_p2 }
  0x6c   : > { %p3712_p13 = por %p3711_p8, %p3710_p4 }
  0x6e   : > { %p3713_p6 = pnand %p3712_p13, %p3706_p0 }
  0x70   : > { %3716 = shalt.err (!%p3713_p6)
}
  0x71   : > { %s3717_s16 = scalar_lea.vmem %s4031_s14, 1024  ;;  %s3815_s11 = smov [#allocation2]  }
  0x72   : > { %p3718_p10 = scmp.ne.s32.totalorder %s4031_s14, %s3717_s16  ;;  %s3722_s12 = sshll.u32 %s3815_s11, 4  ;;  %s3723_s12 = int_to_ptr.vmem [resolvable:$false] %s3722_s12 }
  0x73   : > { %s3724_s19 = scalar_lea.vmem %s3723_s12, 2048  ;;  %p3725_p12 = scmp.lt.s32.totalorder %s4031_s14, %s3723_s12 }
  0x74   : > { %p3720_p3 = pnand %p3718_p10, %p3704_p9  ;;  %p3726_p2 = scmp.lt.s32.totalorder %s3724_s19, %s3717_s16 }
  0x76   : > { %p3721_p7 = pneg %p3720_p3  ;;  %p3727_p1 = por %p3726_p2, %p3725_p12 }
  0x78   : > { %p3728_p4 = pnand %p3727_p1, %p3721_p7 }
  0x7a   : > { %3731 = shalt.err (!%p3728_p4)
}
  0x7b   : > { %3303 = dma.hbm_to_vmem [thread:$0]  (!%p4027_p11), %s4025_s17, 1024, %s4031_s14, %s4033_s8, %s3812_s29, %s3812_s29, %s3813_s10  }
  0x7c   : > { %p4905_p9 = scmp.ne.s32.totalorder %s4898_s9, 0 }
  0x7d   : > { %s4067_s20 = sand.u32 (!%p4905_p9), 1, %s3798_s25   ;;  %p4906_p0 = scmp.ne.s32.totalorder (!%p4905_p9), %s4895_s30, 0 }
  0x7e   : > { %293 = sbr.rel (%p4905_p9) target bundleno = 1762 (0x6e2), region = 48  ;;  %s2917_s21 = sshll.u32 (!%p4905_p9), %s4067_s20, 6 }
  0x7f   : > { %s296_s22 = scalar_lea.sflag (!%p4905_p9), [#allocation3], %s4067_s20  ;;  %s299_s1 = scalar_lea.vmem (!%p4905_p9), [#allocation2], %s2917_s21 }
  0x85   : > { %3777 = dma.done.wait (%p4906_p0), %s296_s22, 1024  }
  0x86   : > { %3779 = vsyncadd (%p4906_p0), %s296_s22, 4294966272  ;;  %p4907_p11 = scmp.eq.s32.totalorder %s3889_s28, 0 }
  0x88   : > { %3781 = dma.done.wait (%p4907_p11), [#allocation6], 1280   ;;  %p4908_p8 = pmov %p4907_p11 }
  0x8a   : > { %3783 = vsyncadd (%p4908_p8), [#allocation6], 4294966016  ;;  %p4909_p13 = pmov %p4908_p8 }
  0x8b   : > { %p4910_p6 = pmov %p4908_p8 }
  0x8c   : > { %3785 = dma.done.wait (%p4909_p13), [#allocation9], 1024  }
  0x8d   : > { %3787 = vsyncadd (%p4910_p6), [#allocation9], 4294966272  ;;  %v3486_v0 = vld [vmem:[#allocation5] sm:$0xff]   ;;  %v3487_v1 = vld [vmem:[#allocation5 + $0x8] sm:$0xff]   ;;  %vm380_vm0 = vcmask 261120   ;;  %s3816_s29 = smov 120  }
  0x8e   : > { %3054 = vmatprep.subr.bf16.mxu0 %v3486_v0  ;;  %3270 = vmatprep.subr.bf16.mxu1 %v3486_v0  ;;  %v345_v2 = vld [vmem:[%s299_s1] sm:$0xff]  ;;  %v346_v3 = vld [vmem:[%s299_s1 + $0x8] sm:$0xff]  ;;  %v347_v7 = vld [vmem:[%s299_s1 + $0x10] sm:$0xff]  ;;  %s3817_s10 = smov 112   ;;  %v3818_v39 = vmov 0.0   ;;  %vm3819_vm1 = vmmov 0  }
  0x8f   : > { %v349_v4 = vld [vmem:[%s299_s1 + $0x20] sm:$0xff]  ;;  %3055 = vmatpush3.bf16.msra.mxu0 %v3486_v0  ;;  %3272 = vmatpush3.bf16.msra.mxu1 %v3486_v0  ;;  %v353_v5 = vpack.c.bf16 %v346_v3, %v345_v2  ;;  %v350_v6 = vld [vmem:[%s299_s1 + $0x28] sm:$0xff]  ;;  %v348_v8 = vld [vmem:[%s299_s1 + $0x18] sm:$0xff]  ;;  %s3820_s17 = smov 104   ;;  %s3821_s14 = smov 96   ;;  %vm557_vm2 = vcmask 64512  }
  0x90   : > { %3056 = vmatprep.subr.bf16.mxu0 %v3487_v1  ;;  %3271 = vmatprep.subr.bf16.mxu1 %v3487_v1  ;;  %v355_v9 = vpack.c.bf16 %v350_v6, %v349_v4  ;;  %v351_v10 = vld [vmem:[%s299_s1 + $0x30] sm:$0xff]  ;;  %v352_v11 = vld [vmem:[%s299_s1 + $0x38] sm:$0xff]  ;;  %v354_v12 = vpack.c.bf16 %v348_v8, %v347_v7  ;;  %v2922_v15 = vld [vmem:[%s4884_s2] ss:$0 sm:$0xff]  ;;  %s3822_s8 = smov 64   ;;  %vm1435_vm3 = vcmask 130048  }
  0x91   : > { %3058 = vmatprep.mubr.msk.bf16.mxu0 %vm380_vm0, %v353_v5  ;;  %v356_v13 = vpack.c.bf16 %v352_v11, %v351_v10  ;;  %s3823_s23 = smov 8   ;;  %s3824_s16 = smov 16   ;;  %vm2668_vm4 = vcmask 195584  }
  0x92   : > { %3062 = vmatprep.mubr.msk.bf16.mxu1 %vm380_vm0, %v355_v9  ;;  %s3825_s1 = smov 24   ;;  %s3826_s11 = smov [#allocation10]  }
  0x93   : > { %3057 = vmatpush3.bf16.msra.mxu0 %v3487_v1  ;;  %3273 = vmatpush3.bf16.msra.mxu1 %v3487_v1  ;;  %s3736_s12 = sshll.u32 %s3826_s11, 4  ;;  %s3737_s12 = int_to_ptr.vmem [resolvable:$false] %s3736_s12 }
  0x94   : > { %3066 = vmatprep.subr.bf16.mxu1 %v3818_v39  ;;  %3078 = vmatprep.subr.bf16.mxu0 %v3818_v39  ;;  %s3738_s19 = scalar_lea.vmem %s3737_s12, 2048 }
  0x96   : > { %3059 = vmatmul.mubr.msk.bf16.vlgmr.msra.gmra.mrb[0].mxu0 %vm380_vm0, %v354_v12  ;;  %3063 = vmatmul.mubr.msk.bf16.vlgmr.msra.gmra.mrb[0].mxu1 %vm380_vm0, %v356_v13 }
  0x97   : > { %3068 = vmatprep.mubr.msk.bf16.mxu1 %vm3819_vm1, %v3818_v39  ;;  %3080 = vmatprep.mubr.msk.bf16.mxu0 %vm3819_vm1, %v3818_v39 }
 0x169   : > { %v3060_v14 = vpop.f32.mrb[0].mxu0  ;;  %v3064_v16 = vpop.f32.mrb[0].mxu1 }
 0x16a   : > { %v452_v17 = vadd.f32 %v3064_v16, %v2922_v15  ;;  %v427_v18 = vpop.f32.mrb[1].mxu0  ;;  %v443_v19 = vpop.f32.mrb[1].mxu1  ;;  %v436_v23 = vadd.f32 %v3060_v14, %v2922_v15 }
 0x16b   : > { %v444_v20 = vadd.f32 %v2922_v15, %v443_v19  ;;  %v3061_v21 = vpop.f32.mrb[2].mxu0  ;;  %v3065_v22 = vpop.f32.mrb[2].mxu1  ;;  %v428_v28 = vadd.f32 %v2922_v15, %v427_v18 }
 0x16c   : > { %v439_v24 = vadd.f32 %v3061_v21, %v2922_v15  ;;  %v455_v25 = vadd.f32 %v3065_v22, %v2922_v15  ;;  %v430_v26 = vpop.f32.mrb[3].mxu0  ;;  %v446_v27 = vpop.f32.mrb[3].mxu1 }
 0x16d   : > { %v431_v29 = vadd.f32 %v2922_v15, %v430_v26  ;;  %v447_v30 = vadd.f32 %v2922_v15, %v446_v27 }
 0x16e   : > { %v3381_v31 = vpack.i.bf16 %v455_v25, %v452_v17  ;;  %v3371_v32 = vpack.i.bf16 %v439_v24, %v436_v23  ;;  %v4094_v36 = vpack.c.bf16 %v439_v24, %v436_v23  ;;  %v4096_v37 = vpack.c.bf16 %v455_v25, %v452_v17 }
 0x16f   : > { %v3376_v33 = vpack.i.bf16 %v447_v30, %v444_v20  ;;  %v3366_v34 = vpack.i.bf16 %v431_v29, %v428_v28  ;;  %v4092_v35 = vpack.c.bf16 %v431_v29, %v428_v28  ;;  %v4098_v38 = vpack.c.bf16 %v447_v30, %v444_v20 }
 0x171   : > { %3377 = vrot.lane.b32.xlu1 %v3376_v33, %s3816_s29  ;;  %3367 = vrot.lane.b32.xlu0 %v3366_v34, %s3816_s29 }
 0x175   : > { %3382 = vrot.lane.b32.xlu1 %v3381_v31, %s3816_s29  ;;  %3372 = vrot.lane.b32.xlu0 %v3371_v32, %s3816_s29  ;;  %s341_s29 = scalar_lea.vmem [#allocation10], %s2917_s21 }
 0x179   : > { %3392 = vrot.lane.b32.xlu1 %v3371_v32, %s3817_s10  ;;  %3387 = vrot.lane.b32.xlu0 %v3366_v34, %s3817_s10 }
 0x17d   : > { %3402 = vrot.lane.b32.xlu1 %v3381_v31, %s3817_s10  ;;  %3397 = vrot.lane.b32.xlu0 %v3376_v33, %s3817_s10  ;;  %s2977_s10 = sshll.u32 %s3889_s28, 10  ;;  %s2790_s28 = scalar_lea.sflag [#allocation4], %s4067_s20 }
 0x181   : > { %3412 = vrot.lane.b32.xlu1 %v3371_v32, %s3820_s17  ;;  %3407 = vrot.lane.b32.xlu0 %v3366_v34, %s3820_s17 }
 0x185   : > { %3417 = vrot.lane.b32.xlu1 %v3376_v33, %s3820_s17  ;;  %555 = vrot.lane.b32.xlu0 %v4092_v35, %s3821_s14 }
 0x189   : > { %606 = vrot.lane.b32.xlu1 %v4094_v36, %s3821_s14  ;;  %3422 = vrot.lane.b32.xlu0 %v3381_v31, %s3820_s17  ;;  %s2804_s17 = sshll.u32 %s341_s29, 4  ;;  %s4835_s17 = int_to_ptr.vmem [resolvable:$true] %s2804_s17 }
 0x18a   : > { %p3739_p12 = scmp.lt.s32.totalorder %s4835_s17, %s3737_s12 }
 0x18d   : > { %706 = vrot.lane.b32.xlu1 %v4096_v37, %s3821_s14  ;;  %656 = vrot.lane.b32.xlu0 %v4098_v38, %s3821_s14 }
 0x1e3   : > { %v3378_v40 = vpop.permute.xlu1 %3377  ;;  %v3368_v41 = vpop.permute.xlu0 %3367 }
 0x1e4   : > { %v3380_v42 = vunpack.i.h.bf16 %v3378_v40  ;;  %v3379_v43 = vunpack.i.l.bf16 %v3378_v40  ;;  %v3370_v44 = vunpack.i.h.bf16 %v3368_v41  ;;  %v3369_v45 = vunpack.i.l.bf16 %v3368_v41 }
 0x1e6   : > { %v4114_v46 = vpack.c.bf16 %v3370_v44, %v3369_v45  ;;  %v4118_v51 = vpack.c.bf16 %v3380_v42, %v3379_v43 }
 0x1e7   : > { %v3383_v47 = vpop.permute.xlu1 %3382  ;;  %v3373_v48 = vpop.permute.xlu0 %3372 }
 0x1e8   : > { %v3375_v49 = vunpack.i.h.bf16 %v3373_v48  ;;  %v3374_v50 = vunpack.i.l.bf16 %v3373_v48  ;;  %756 = vrot.lane.b32.xlu0 %v4114_v46, %s3821_s14  ;;  %v3385_v52 = vunpack.i.h.bf16 %v3383_v47  ;;  %v3384_v53 = vunpack.i.l.bf16 %v3383_v47 }
 0x1ea   : > { %v4120_v54 = vpack.c.bf16 %v3375_v49, %v3374_v50  ;;  %v4126_v61 = vpack.c.bf16 %v3385_v52, %v3384_v53 }
 0x1eb   : > { %v3393_v55 = vpop.permute.xlu1 %3392  ;;  %v3388_v56 = vpop.permute.xlu0 %3387 }
 0x1ec   : > { %v3390_v57 = vunpack.i.h.bf16 %v3388_v56  ;;  %v3389_v58 = vunpack.i.l.bf16 %v3388_v56  ;;  %806 = vrot.lane.b32.xlu1 %v4120_v54, %s3821_s14  ;;  %856 = vrot.lane.b32.xlu0 %v4118_v51, %s3821_s14  ;;  %v3395_v59 = vunpack.i.h.bf16 %v3393_v55  ;;  %v3394_v60 = vunpack.i.l.bf16 %v3393_v55 }
 0x1ee   : > { %v4128_v62 = vpack.c.bf16 %v3390_v57, %v3389_v58  ;;  %v4134_v5 = vpack.c.bf16 %v3395_v59, %v3394_v60  ;;  %v1355_v59 = vld [vmem:[#allocation7] sm:$0xff] }
 0x1ef   : > { %v3403_v63 = vpop.permute.xlu1 %3402  ;;  %v3398_v0 = vpop.permute.xlu0 %3397 }
 0x1f0   : > { %v3400_v1 = vunpack.i.h.bf16 %v3398_v0  ;;  %v3399_v2 = vunpack.i.l.bf16 %v3398_v0  ;;  %906 = vrot.lane.b32.xlu1 %v4126_v61, %s3821_s14  ;;  %956 = vrot.lane.b32.xlu0 %v4128_v62, %s3821_s14  ;;  %v3405_v3 = vunpack.i.h.bf16 %v3403_v63  ;;  %v3404_v4 = vunpack.i.l.bf16 %v3403_v63 }
 0x1f2   : > { %v4136_v6 = vpack.c.bf16 %v3400_v1, %v3399_v2  ;;  %v4142_v13 = vpack.c.bf16 %v3405_v3, %v3404_v4  ;;  %v1356_v4 = vld [vmem:[#allocation7 + $0x8] sm:$0xff] }
 0x1f3   : > { %v3413_v7 = vpop.permute.xlu1 %3412  ;;  %v3408_v8 = vpop.permute.xlu0 %3407 }
 0x1f4   : > { %v3410_v9 = vunpack.i.h.bf16 %v3408_v8  ;;  %v3409_v10 = vunpack.i.l.bf16 %v3408_v8  ;;  %1006 = vrot.lane.b32.xlu1 %v4134_v5, %s3821_s14  ;;  %1056 = vrot.lane.b32.xlu0 %v4136_v6, %s3821_s14  ;;  %v3415_v11 = vunpack.i.h.bf16 %v3413_v7  ;;  %v3414_v12 = vunpack.i.l.bf16 %v3413_v7  ;;  %v4291_v8 = vld [vmem:[#allocation8 + $0x20] sm:$0xff] }
 0x1f6   : > { %v4144_v14 = vpack.c.bf16 %v3410_v9, %v3409_v10  ;;  %v4151_v20 = vpack.c.bf16 %v3415_v11, %v3414_v12 }
 0x1f7   : > { %v3418_v15 = vpop.permute.xlu1 %3417  ;;  %v556_v16 = vpop.permute.xlu0 %555 }
 0x1f8   : > { %v3420_v17 = vunpack.i.h.bf16 %v3418_v15  ;;  %v3419_v18 = vunpack.i.l.bf16 %v3418_v15  ;;  %v562_v19 = vsel %vm557_vm2, %v556_v16, 0  ;;  %1106 = vrot.lane.b32.xlu1 %v4142_v13, %s3821_s14  ;;  %1156 = vrot.lane.b32.xlu0 %v4144_v14, %s3821_s14  ;;  %v4293_v16 = vld [vmem:[#allocation8 + $0x28] sm:$0xff] }
 0x1f9   : > { %3067 = vmatpush3.bf16.xpose.msra.mxu1 %v562_v19 }
 0x1fa   : > { %v4153_v21 = vpack.c.bf16 %v3420_v17, %v3419_v18  ;;  %3072 = vmatprep.subr.bf16.mxu1 %v3818_v39  ;;  %v4295_v17 = vld [vmem:[#allocation8 + $0x8] sm:$0xff] }
 0x1fb   : > { %v3423_v22 = vpop.permute.xlu0 %3422  ;;  %v607_v25 = vpop.permute.xlu1 %606 }
 0x1fc   : > { %v3425_v23 = vunpack.i.h.bf16 %v3423_v22  ;;  %v3424_v24 = vunpack.i.l.bf16 %v3423_v22  ;;  %1206 = vrot.lane.b32.xlu1 %v4151_v20, %s3821_s14  ;;  %1256 = vrot.lane.b32.xlu0 %v4153_v21, %s3821_s14  ;;  %v612_v28 = vsel %vm557_vm2, %v607_v25, 0 }
 0x1fe   : > { %v4160_v26 = vpack.c.bf16 %v3425_v23, %v3424_v24  ;;  %v4300_v24 = vld [vmem:[#allocation8 + $0x10] sm:$0xff] }
 0x1ff   : > { %v657_v27 = vpop.permute.xlu0 %656  ;;  %v707_v30 = vpop.permute.xlu1 %706 }
 0x200   : > { %v662_v29 = vsel %vm557_vm2, %v657_v27, 0  ;;  %1851 = vrot.lane.b32.xlu0 %v4094_v36, %s3822_s8  ;;  %3069 = vmatmul.mubr.msk.bf16.vlgmr.msra.gmra.mrb[4].mxu1 %vm557_vm2, %v4092_v35  ;;  %v712_v31 = vsel %vm557_vm2, %v707_v30, 0 }
 0x201   : > { %1306 = vrot.lane.b32.xlu1 %v4160_v26, %s3821_s14  ;;  %3073 = vmatpush3.bf16.xpose.msra.mxu1 %v612_v28 }
 0x202   : > { %3079 = vmatpush3.bf16.xpose.msra.mxu0 %v662_v29  ;;  %3074 = vmatprep.mubr.msk.bf16.mxu1 %vm3819_vm1, %v3818_v39 }
 0x203   : > { %3084 = vmatprep.subr.bf16.mxu1 %v3818_v39  ;;  %3090 = vmatprep.subr.bf16.mxu0 %v3818_v39 }
 0x204   : > { %1945 = vrot.lane.b32.xlu0 %v4096_v37, %s3822_s8 }
 0x205   : > { %1804 = vrot.lane.b32.xlu1 %v4092_v35, %s3822_s8 }
 0x208   : > { %2039 = vrot.lane.b32.xlu0 %v4120_v54, %s3822_s8  ;;  %3075 = vmatmul.mubr.msk.bf16.vlgmr.msra.gmra.mrb[8].mxu1 %vm557_vm2, %v4094_v36 }
 0x209   : > { %3081 = vmatmul.mubr.msk.bf16.vlgmr.msra.gmra.mrb[4].mxu0 %vm557_vm2, %v4098_v38  ;;  %1898 = vrot.lane.b32.xlu1 %v4098_v38, %s3822_s8 }
 0x20a   : > { %3085 = vmatpush3.bf16.xpose.msra.mxu1 %v712_v31  ;;  %3086 = vmatprep.mubr.msk.bf16.mxu1 %vm3819_vm1, %v3818_v39 }
 0x20b   : > { %3096 = vmatprep.subr.bf16.mxu1 %v3818_v39  ;;  %3092 = vmatprep.mubr.msk.bf16.mxu0 %vm3819_vm1, %v3818_v39 }
 0x20c   : > { %2133 = vrot.lane.b32.xlu0 %v4126_v61, %s3822_s8 }
 0x20d   : > { %2321 = vrot.lane.b32.xlu1 %v4142_v13, %s3822_s8 }
 0x210   : > { %2227 = vrot.lane.b32.xlu0 %v4134_v5, %s3822_s8 }
 0x211   : > { %3087 = vmatmul.mubr.msk.bf16.vlgmr.msra.gmra.mrb[12].mxu1 %vm557_vm2, %v4096_v37  ;;  %1992 = vrot.lane.b32.xlu1 %v4114_v46, %s3822_s8 }
 0x212   : > { %3098 = vmatprep.mubr.msk.bf16.mxu1 %vm3819_vm1, %v3818_v39 }
 0x215   : > { %2086 = vrot.lane.b32.xlu1 %v4118_v51, %s3822_s8 }
 0x219   : > { %2180 = vrot.lane.b32.xlu1 %v4128_v62, %s3822_s8 }
 0x21d   : > { %2274 = vrot.lane.b32.xlu1 %v4136_v6, %s3822_s8 }
 0x25a   : > { %v757_v32 = vpop.permute.xlu0 %756 }
 0x25b   : > { %v762_v33 = vsel %vm557_vm2, %v757_v32, 0 }
 0x25c   : > { %3091 = vmatpush3.bf16.xpose.msra.mxu0 %v762_v33  ;;  %v4315_v33 = vld [vmem:[#allocation8 + $0x30] sm:$0xff] }
 0x25d   : > { %3102 = vmatprep.subr.bf16.mxu0 %v3818_v39 }
 0x25e   : > { %v807_v34 = vpop.permute.xlu1 %806  ;;  %v857_v36 = vpop.permute.xlu0 %856 }
 0x25f   : > { %v812_v35 = vsel %vm557_vm2, %v807_v34, 0  ;;  %v862_v37 = vsel %vm557_vm2, %v857_v36, 0  ;;  %v4317_v34 = vld [vmem:[#allocation8 + $0x18] sm:$0xff] }
 0x260   : > { %3097 = vmatpush3.bf16.xpose.msra.mxu1 %v812_v35 }
 0x261   : > { %3108 = vmatprep.subr.bf16.mxu1 %v3818_v39 }
 0x262   : > { %v907_v38 = vpop.permute.xlu1 %906  ;;  %v957_v41 = vpop.permute.xlu0 %956 }
 0x263   : > { %3093 = vmatmul.mubr.msk.bf16.vlgmr.msra.gmra.mrb[8].mxu0 %vm557_vm2, %v4114_v46  ;;  %v912_v40 = vsel %vm557_vm2, %v907_v38, 0  ;;  %v962_v42 = vsel %vm557_vm2, %v957_v41, 0 }
 0x264   : > { %3103 = vmatpush3.bf16.xpose.msra.mxu0 %v862_v37  ;;  %3104 = vmatprep.mubr.msk.bf16.mxu0 %vm3819_vm1, %v3818_v39 }
 0x265   : > { %3114 = vmatprep.subr.bf16.mxu0 %v3818_v39 }
 0x266   : > { %v1007_v43 = vpop.permute.xlu1 %1006  ;;  %v1057_v45 = vpop.permute.xlu0 %1056 }
 0x267   : > { %3099 = vmatmul.mubr.msk.bf16.vlgmr.msra.gmra.mrb[16].mxu1 %vm557_vm2, %v4120_v54  ;;  %v1012_v44 = vsel %vm557_vm2, %v1007_v43, 0  ;;  %v1062_v46 = vsel %vm557_vm2, %v1057_v45, 0  ;;  %v4329_v45 = vld [vmem:[#allocation8 + $0x38] sm:$0xff] }
 0x268   : > { %3109 = vmatpush3.bf16.xpose.msra.mxu1 %v912_v40  ;;  %3110 = vmatprep.mubr.msk.bf16.mxu1 %vm3819_vm1, %v3818_v39 }
 0x269   : > { %3120 = vmatprep.subr.bf16.mxu1 %v3818_v39 }
 0x26a   : > { %v1107_v47 = vpop.permute.xlu1 %1106  ;;  %v1157_v49 = vpop.permute.xlu0 %1156 }
 0x26b   : > { %3105 = vmatmul.mubr.msk.bf16.vlgmr.msra.gmra.mrb[12].mxu0 %vm557_vm2, %v4118_v51  ;;  %v1112_v48 = vsel %vm557_vm2, %v1107_v47, 0  ;;  %v1162_v50 = vsel %vm557_vm2, %v1157_v49, 0 }
 0x26c   : > { %3115 = vmatpush3.bf16.xpose.msra.mxu0 %v962_v42  ;;  %3116 = vmatprep.mubr.msk.bf16.mxu0 %vm3819_vm1, %v3818_v39 }
 0x26d   : > { %3126 = vmatprep.subr.bf16.mxu0 %v3818_v39 }
 0x26e   : > { %v1207_v51 = vpop.permute.xlu1 %1206  ;;  %v1257_v53 = vpop.permute.xlu0 %1256 }
 0x26f   : > { %3111 = vmatmul.mubr.msk.bf16.vlgmr.msra.gmra.mrb[20].mxu1 %vm557_vm2, %v4126_v61  ;;  %v1212_v52 = vsel %vm557_vm2, %v1207_v51, 0  ;;  %v1262_v54 = vsel %vm557_vm2, %v1257_v53, 0  ;;  %v4284_v61 = vld [vmem:[#allocation8] sm:$0xff] }
 0x270   : > { %3121 = vmatpush3.bf16.xpose.msra.mxu1 %v1012_v44  ;;  %3122 = vmatprep.mubr.msk.bf16.mxu1 %vm3819_vm1, %v3818_v39 }
 0x271   : > { %3132 = vmatprep.subr.bf16.mxu1 %v3818_v39 }
 0x272   : > { %v1852_v58 = vpop.permute.xlu0 %1851 }
 0x273   : > { %3117 = vmatmul.mubr.msk.bf16.vlgmr.msra.gmra.mrb[16].mxu0 %vm557_vm2, %v4128_v62  ;;  %v1307_v55 = vpop.permute.xlu1 %1306 }
 0x274   : > { %3127 = vmatpush3.bf16.xpose.msra.mxu0 %v1062_v46  ;;  %3128 = vmatprep.mubr.msk.bf16.mxu0 %vm3819_vm1, %v3818_v39  ;;  %v1312_v56 = vsel %vm557_vm2, %v1307_v55, 0  ;;  %v1358_v55 = vld [vmem:[#allocation7 + $0x18] sm:$0xff] }
 0x275   : > { %3138 = vmatprep.subr.bf16.mxu0 %v3818_v39 }
 0x277   : > { %3123 = vmatmul.mubr.msk.bf16.vlgmr.msra.gmra.mrb[24].mxu1 %vm557_vm2, %v4134_v5  ;;  %v1805_v57 = vpop.permute.xlu1 %1804 }
 0x278   : > { %3133 = vmatpush3.bf16.xpose.msra.mxu1 %v1112_v48  ;;  %3134 = vmatprep.mubr.msk.bf16.mxu1 %vm3819_vm1, %v3818_v39 }
 0x279   : > { %3144 = vmatprep.subr.bf16.mxu1 %v3818_v39 }
 0x27b   : > { %3129 = vmatmul.mubr.msk.bf16.vlgmr.msra.gmra.mrb[20].mxu0 %vm557_vm2, %v4136_v6 }
 0x27c   : > { %3139 = vmatpush3.bf16.xpose.msra.mxu0 %v1162_v50  ;;  %3140 = vmatprep.mubr.msk.bf16.mxu0 %vm3819_vm1, %v3818_v39 }
 0x27d   : > { %3150 = vmatprep.subr.bf16.mxu0 %v3818_v39 }
 0x27f   : > { %3135 = vmatmul.mubr.msk.bf16.vlgmr.msra.gmra.mrb[28].mxu1 %vm557_vm2, %v4142_v13 }
 0x280   : > { %3145 = vmatpush3.bf16.xpose.msra.mxu1 %v1212_v52  ;;  %3146 = vmatprep.mubr.msk.bf16.mxu1 %vm3819_vm1, %v3818_v39  ;;  %v1357_v52 = vld [vmem:[#allocation7 + $0x10] sm:$0xff] }
 0x281   : > { %3156 = vmatprep.subr.bf16.mxu1 %v3818_v39 }
 0x283   : > { %3141 = vmatmul.mubr.msk.bf16.vlgmr.msra.gmra.mrb[24].mxu0 %vm557_vm2, %v4144_v14 }
 0x284   : > { %3151 = vmatpush3.bf16.xpose.msra.mxu0 %v1262_v54  ;;  %3152 = vmatprep.mubr.msk.bf16.mxu0 %vm3819_vm1, %v3818_v39 }
 0x285   : > { %3162 = vmatprep.subr.bf16.mxu0 %v3818_v39 }
 0x287   : > { %3147 = vmatmul.mubr.msk.bf16.vlgmr.msra.gmra.mrb[32].mxu1 %vm557_vm2, %v4151_v20 }
 0x288   : > { %3157 = vmatpush3.bf16.xpose.msra.mxu1 %v1312_v56  ;;  %3158 = vmatprep.mubr.msk.bf16.mxu1 %vm3819_vm1, %v3818_v39 }
 0x289   : > { %3168 = vmatprep.subr.bf16.mxu1 %v3818_v39 }
 0x28b   : > { %3153 = vmatmul.mubr.msk.bf16.vlgmr.msra.gmra.mrb[28].mxu0 %vm557_vm2, %v4153_v21 }
 0x28c   : > { %3163 = vmatpush3.bf16.msra.mxu0 %v1805_v57  ;;  %3164 = vmatprep.mubr.msk.bf16.mxu0 %vm3819_vm1, %v3818_v39 }
 0x28d   : > { %3174 = vmatprep.subr.bf16.mxu0 %v3818_v39 }
 0x28f   : > { %3159 = vmatmul.mubr.msk.bf16.vlgmr.msra.gmra.mrb[36].mxu1 %vm557_vm2, %v4160_v26 }
 0x290   : > { %3169 = vmatpush3.bf16.msra.mxu1 %v1852_v58  ;;  %3170 = vmatprep.mubr.msk.bf16.mxu1 %vm3819_vm1, %v3818_v39 }
 0x291   : > { %3180 = vmatprep.subr.bf16.mxu1 %v3818_v39 }
 0x2d3   : > { %v598_v60 = vpop.f32.mrb[4].mxu1 }
 0x2d4   : > { %v1363_v62 = vadd.f32 %v1355_v59, %v598_v60  ;;  %v3070_v63 = vpop.f32.mrb[5].mxu1 }
 0x2d5   : > { %v601_v0 = vpop.f32.mrb[6].mxu1 }
 0x2d6   : > { %v3071_v1 = vpop.f32.mrb[7].mxu1  ;;  %v4287_v2 = vadd.f32 %v4284_v61, %v1363_v62  ;;  %v1364_v9 = vadd.f32 %v1356_v4, %v601_v0 }
 0x2d8   : > { %v1436_v3 = vsel %vm1435_vm3, %v4287_v2, -inf  ;;  %v4308_v28 = vadd.f32 %v4295_v17, %v1364_v9 }
 0x2d9   : > { %1437 = vmax.xlane.f32.xlu0 %v1436_v3 }
 0x2da   : > { %v1439_v37 = vsel %vm1435_vm3, %v4308_v28, -inf }
 0x2db   : > { %v648_v5 = vpop.f32.mrb[8].mxu1 }
 0x2dc   : > { %v698_v6 = vpop.f32.mrb[4].mxu0  ;;  %v3076_v7 = vpop.f32.mrb[9].mxu1  ;;  %v1365_v18 = vadd.f32 %v1355_v59, %v648_v5 }
 0x2dd   : > { %v1367_v10 = vadd.f32 %v1355_v59, %v698_v6  ;;  %v3082_v11 = vpop.f32.mrb[5].mxu0  ;;  %v651_v12 = vpop.f32.mrb[10].mxu1 }
 0x2de   : > { %v701_v13 = vpop.f32.mrb[6].mxu0  ;;  %v3077_v15 = vpop.f32.mrb[11].mxu1  ;;  %v1366_v29 = vadd.f32 %v1356_v4, %v651_v12  ;;  %v4313_v31 = vadd.f32 %v4300_v24, %v1365_v18 }
 0x2df   : > { %v1368_v19 = vadd.f32 %v1356_v4, %v701_v13  ;;  %v3083_v22 = vpop.f32.mrb[7].mxu0  ;;  %v4298_v23 = vadd.f32 %v4291_v8, %v1367_v10 }
 0x2e0   : > { %v1442_v42 = vsel %vm1435_vm3, %v4313_v31, -inf  ;;  %v4327_v44 = vadd.f32 %v4317_v34, %v1366_v29 }
 0x2e1   : > { %v1448_v25 = vsel %vm1435_vm3, %v4298_v23, -inf  ;;  %v4305_v27 = vadd.f32 %v4293_v16, %v1368_v19 }
 0x2e2   : > { %1449 = vmax.xlane.f32.xlu1 %v1448_v25  ;;  %v1445_v47 = vsel %vm1435_vm3, %v4327_v44, -inf }
 0x2e3   : > { %v1451_v30 = vsel %vm1435_vm3, %v4305_v27, -inf }
 0x2e4   : > { %v748_v32 = vpop.f32.mrb[12].mxu1  ;;  %1452 = vmax.xlane.f32.xlu0 %v1451_v30 }
 0x2e5   : > { %v1369_v35 = vadd.f32 %v1355_v59, %v748_v32  ;;  %v3088_v36 = vpop.f32.mrb[13].mxu1 }
 0x2e6   : > { %v751_v38 = vpop.f32.mrb[14].mxu1  ;;  %1440 = vmax.xlane.f32.xlu1 %v1439_v37 }
 0x2e7   : > { %v1370_v40 = vadd.f32 %v1356_v4, %v751_v38  ;;  %v3089_v41 = vpop.f32.mrb[15].mxu1  ;;  %v4324_v43 = vadd.f32 %v4315_v33, %v1369_v35 }
 0x2e8   : > { %1443 = vmax.xlane.f32.xlu0 %v1442_v42 }
 0x2e9   : > { %v1454_v46 = vsel %vm1435_vm3, %v4324_v43, -inf  ;;  %v4336_v48 = vadd.f32 %v4329_v45, %v1370_v40 }
 0x2ea   : > { %1455 = vmax.xlane.f32.xlu1 %v1454_v46  ;;  %v1359_v46 = vld [vmem:[#allocation7 + $0x20] sm:$0xff] }
 0x2eb   : > { %v1457_v49 = vsel %vm1435_vm3, %v4336_v48, -inf }
 0x2ec   : > { %1446 = vmax.xlane.f32.xlu0 %v1445_v47 }
 0x2f0   : > { %1458 = vmax.xlane.f32.xlu0 %v1457_v49 }
 0x336   : > { %v798_v50 = vpop.f32.mrb[8].mxu0 }
 0x337   : > { %v3094_v51 = vpop.f32.mrb[9].mxu0  ;;  %v1371_v57 = vadd.f32 %v1357_v52, %v798_v50 }
 0x338   : > { %v801_v53 = vpop.f32.mrb[10].mxu0 }
 0x339   : > { %v3095_v54 = vpop.f32.mrb[11].mxu0  ;;  %v1372_v62 = vadd.f32 %v1358_v55, %v801_v53  ;;  %v4349_v7 = vadd.f32 %v4284_v61, %v1371_v57 }
 0x33a   : > { %v848_v56 = vpop.f32.mrb[16].mxu1 }
 0x33b   : > { %v1373_v58 = vadd.f32 %v1357_v52, %v848_v56  ;;  %v3100_v59 = vpop.f32.mrb[17].mxu1  ;;  %v4354_v12 = vadd.f32 %v4295_v17, %v1372_v62  ;;  %v1460_v22 = vsel %vm1435_vm3, %v4349_v7, -inf }
 0x33c   : > { %v851_v60 = vpop.f32.mrb[18].mxu1 }
 0x33d   : > { %v1374_v63 = vadd.f32 %v1358_v55, %v851_v60  ;;  %v3101_v0 = vpop.f32.mrb[19].mxu1  ;;  %v4341_v1 = vadd.f32 %v4300_v24, %v1373_v58  ;;  %v1463_v35 = vsel %vm1435_vm3, %v4354_v12, -inf }
 0x33e   : > { %v898_v3 = vpop.f32.mrb[12].mxu0 }
 0x33f   : > { %v3106_v4 = vpop.f32.mrb[13].mxu0  ;;  %v1466_v5 = vsel %vm1435_vm3, %v4341_v1, -inf  ;;  %v4346_v6 = vadd.f32 %v4317_v34, %v1374_v63  ;;  %v1375_v15 = vadd.f32 %v1357_v52, %v898_v3 }
 0x340   : > { %v901_v9 = vpop.f32.mrb[14].mxu0  ;;  %1467 = vmax.xlane.f32.xlu1 %v1466_v5 }
 0x341   : > { %v3107_v10 = vpop.f32.mrb[15].mxu0  ;;  %v1469_v11 = vsel %vm1435_vm3, %v4346_v6, -inf  ;;  %v1376_v29 = vadd.f32 %v1358_v55, %v901_v9  ;;  %v4369_v42 = vadd.f32 %v4291_v8, %v1375_v15 }
 0x342   : > { %v948_v13 = vpop.f32.mrb[20].mxu1  ;;  %1470 = vmax.xlane.f32.xlu0 %v1469_v11 }
 0x343   : > { %v1377_v18 = vadd.f32 %v1357_v52, %v948_v13  ;;  %v3112_v19 = vpop.f32.mrb[21].mxu1  ;;  %v4374_v51 = vadd.f32 %v4293_v16, %v1376_v29  ;;  %v1360_v52 = vld [vmem:[#allocation7 + $0x28] sm:$0xff]  ;;  %v1472_v57 = vsel %vm1435_vm3, %v4369_v42, -inf }
 0x344   : > { %v951_v25 = vpop.f32.mrb[22].mxu1  ;;  %1461 = vmax.xlane.f32.xlu1 %v1460_v22 }
 0x345   : > { %v1378_v30 = vadd.f32 %v1358_v55, %v951_v25  ;;  %v3113_v32 = vpop.f32.mrb[23].mxu1  ;;  %v4361_v36 = vadd.f32 %v4315_v33, %v1377_v18  ;;  %v1475_v63 = vsel %vm1435_vm3, %v4374_v51, -inf }
 0x346   : > { %1464 = vmax.xlane.f32.xlu0 %v1463_v35  ;;  %v998_v37 = vpop.f32.mrb[16].mxu0 }
 0x347   : > { %v3118_v38 = vpop.f32.mrb[17].mxu0  ;;  %v1478_v40 = vsel %vm1435_vm3, %v4361_v36, -inf  ;;  %v4366_v41 = vadd.f32 %v4329_v45, %v1378_v30  ;;  %v1379_v54 = vadd.f32 %v1359_v46, %v998_v37 }
 0x348   : > { %v1001_v47 = vpop.f32.mrb[18].mxu0  ;;  %1479 = vmax.xlane.f32.xlu1 %v1478_v40 }
 0x349   : > { %v3119_v49 = vpop.f32.mrb[19].mxu0  ;;  %v1481_v50 = vsel %vm1435_vm3, %v4366_v41, -inf  ;;  %v1380_v59 = vadd.f32 %v1360_v52, %v1001_v47  ;;  %v4389_v10 = vadd.f32 %v4284_v61, %v1379_v54 }
 0x34a   : > { %v1048_v53 = vpop.f32.mrb[24].mxu1  ;;  %1482 = vmax.xlane.f32.xlu0 %v1481_v50 }
 0x34b   : > { %v1381_v55 = vadd.f32 %v1359_v46, %v1048_v53  ;;  %v3124_v56 = vpop.f32.mrb[25].mxu1  ;;  %v4394_v18 = vadd.f32 %v4295_v17, %v1380_v59  ;;  %v1484_v30 = vsel %vm1435_vm3, %v4389_v10, -inf  ;;  %v1362_v59 = vld [vmem:[#allocation7 + $0x38] sm:$0xff] }
 0x34c   : > { %v1051_v58 = vpop.f32.mrb[26].mxu1  ;;  %1473 = vmax.xlane.f32.xlu1 %v1472_v57 }
 0x34d   : > { %v1382_v60 = vadd.f32 %v1360_v52, %v1051_v58  ;;  %v3125_v62 = vpop.f32.mrb[27].mxu1  ;;  %v4381_v0 = vadd.f32 %v4300_v24, %v1381_v55  ;;  %v1487_v40 = vsel %vm1435_vm3, %v4394_v18, -inf }
 0x34e   : > { %1476 = vmax.xlane.f32.xlu0 %v1475_v63  ;;  %v1098_v3 = vpop.f32.mrb[20].mxu0 }
 0x34f   : > { %v3130_v4 = vpop.f32.mrb[21].mxu0  ;;  %v1490_v5 = vsel %vm1435_vm3, %v4381_v0, -inf  ;;  %v4386_v9 = vadd.f32 %v4317_v34, %v1382_v60  ;;  %v1383_v22 = vadd.f32 %v1359_v46, %v1098_v3 }
 0x350   : > { %v1101_v11 = vpop.f32.mrb[22].mxu0  ;;  %1491 = vmax.xlane.f32.xlu1 %v1490_v5 }
 0x351   : > { %v3131_v13 = vpop.f32.mrb[23].mxu0  ;;  %v1493_v15 = vsel %vm1435_vm3, %v4386_v9, -inf  ;;  %v1384_v35 = vadd.f32 %v1360_v52, %v1101_v11  ;;  %v4409_v54 = vadd.f32 %v4291_v8, %v1383_v22 }
 0x352   : > { %v1148_v19 = vpop.f32.mrb[28].mxu1  ;;  %1494 = vmax.xlane.f32.xlu0 %v1493_v15 }
 0x353   : > { %v1385_v25 = vadd.f32 %v1359_v46, %v1148_v19  ;;  %v3136_v29 = vpop.f32.mrb[29].mxu1  ;;  %v4414_v58 = vadd.f32 %v4293_v16, %v1384_v35  ;;  %v1496_v4 = vsel %vm1435_vm3, %v4409_v54, -inf }
 0x354   : > { %v1151_v32 = vpop.f32.mrb[30].mxu1  ;;  %1485 = vmax.xlane.f32.xlu1 %v1484_v30 }
 0x355   : > { %v1386_v37 = vadd.f32 %v1360_v52, %v1151_v32  ;;  %v3137_v38 = vpop.f32.mrb[31].mxu1  ;;  %v4401_v47 = vadd.f32 %v4315_v33, %v1385_v25  ;;  %v1361_v52 = vld [vmem:[#allocation7 + $0x30] sm:$0xff]  ;;  %v1499_v19 = vsel %vm1435_vm3, %v4414_v58, -inf }
 0x356   : > { %1488 = vmax.xlane.f32.xlu0 %v1487_v40  ;;  %v1198_v49 = vpop.f32.mrb[24].mxu0 }
 0x357   : > { %v3142_v50 = vpop.f32.mrb[25].mxu0  ;;  %v1502_v46 = vsel %vm1435_vm3, %v4401_v47, -inf  ;;  %v4406_v53 = vadd.f32 %v4329_v45, %v1386_v37  ;;  %v1387_v62 = vadd.f32 %v1361_v52, %v1198_v49  ;;  %v4436_v49 = vpop.permute.xlu1 %1898 }
 0x358   : > { %v1201_v55 = vpop.f32.mrb[26].mxu0  ;;  %1503 = vmax.xlane.f32.xlu1 %v1502_v46 }
 0x359   : > { %v3143_v56 = vpop.f32.mrb[27].mxu0  ;;  %v1505_v57 = vsel %vm1435_vm3, %v4406_v53, -inf  ;;  %v1388_v11 = vadd.f32 %v1362_v59, %v1201_v55  ;;  %v4429_v35 = vadd.f32 %v4284_v61, %v1387_v62 }
 0x35a   : > { %v1248_v60 = vpop.f32.mrb[32].mxu1  ;;  %1506 = vmax.xlane.f32.xlu0 %v1505_v57 }
 0x35b   : > { %v1389_v63 = vadd.f32 %v1361_v52, %v1248_v60  ;;  %v3148_v3 = vpop.f32.mrb[33].mxu1  ;;  %v1508_v61 = vsel %vm1435_vm3, %v4429_v35, -inf }
 0x35c   : > { %v1251_v5 = vpop.f32.mrb[34].mxu1  ;;  %1497 = vmax.xlane.f32.xlu1 %v1496_v4 }
 0x35d   : > { %v1390_v13 = vadd.f32 %v1362_v59, %v1251_v5  ;;  %v3149_v15 = vpop.f32.mrb[35].mxu1  ;;  %v4421_v22 = vadd.f32 %v4300_v24, %v1389_v63  ;;  %v4434_v24 = vadd.f32 %v4295_v17, %v1388_v11  ;;  %v4453_v5 = vpop.permute.xlu1 %2321 }
 0x35e   : > { %1500 = vmax.xlane.f32.xlu0 %v1499_v19  ;;  %v1298_v25 = vpop.f32.mrb[28].mxu0 }
 0x35f   : > { %v3154_v29 = vpop.f32.mrb[29].mxu0  ;;  %v1514_v30 = vsel %vm1435_vm3, %v4421_v22, -inf  ;;  %v4426_v32 = vadd.f32 %v4317_v34, %v1390_v13  ;;  %v1391_v46 = vadd.f32 %v1361_v52, %v1298_v25  ;;  %v1511_v63 = vsel %vm1435_vm3, %v4434_v24, -inf }
 0x360   : > { %v1301_v37 = vpop.f32.mrb[30].mxu0  ;;  %1515 = vmax.xlane.f32.xlu1 %v1514_v30 }
 0x361   : > { %v3155_v38 = vpop.f32.mrb[31].mxu0  ;;  %v1517_v40 = vsel %vm1435_vm3, %v4426_v32, -inf  ;;  %v1392_v57 = vadd.f32 %v1362_v59, %v1301_v37  ;;  %v4451_v4 = vadd.f32 %v4291_v8, %v1391_v46 }
 0x362   : > { %1518 = vmax.xlane.f32.xlu0 %v1517_v40  ;;  %v1348_v50 = vpop.f32.mrb[36].mxu1 }
 0x363   : > { %v1393_v55 = vadd.f32 %v1361_v52, %v1348_v50  ;;  %v3160_v34 = vpop.f32.mrb[37].mxu1  ;;  %v4458_v11 = vadd.f32 %v4293_v16, %v1392_v57  ;;  %v1520_v13 = vsel %vm1435_vm3, %v4451_v4, -inf }
 0x364   : > { %1509 = vmax.xlane.f32.xlu1 %v1508_v61  ;;  %v1351_v56 = vpop.f32.mrb[38].mxu1 }
 0x365   : > { %v1394_v60 = vadd.f32 %v1362_v59, %v1351_v56  ;;  %v3161_v62 = vpop.f32.mrb[39].mxu1  ;;  %v4443_v17 = vadd.f32 %v4315_v33, %v1393_v55  ;;  %v4460_v33 = vpop.permute.xlu0 %1945  ;;  %v1523_v8 = vsel %vm1435_vm3, %v4458_v11, -inf }
 0x366   : > { %1512 = vmax.xlane.f32.xlu0 %v1511_v63 }
 0x367   : > { %v1526_v3 = vsel %vm1435_vm3, %v4443_v17, -inf  ;;  %v4448_v52 = vadd.f32 %v4329_v45, %v1394_v60  ;;  %v4466_v45 = vpop.permute.xlu1 %1992 }
 0x368   : > { %1527 = vmax.xlane.f32.xlu1 %v1526_v3 }
 0x369   : > { %v1529_v59 = vsel %vm1435_vm3, %v4448_v52, -inf  ;;  %v4468_v15 = vpop.permute.xlu0 %2039 }
 0x36a   : > { %1530 = vmax.xlane.f32.xlu0 %v1529_v59 }
 0x36b   : > { %v4470_v19 = vpop.permute.xlu1 %2086 }
 0x36c   : > { %1521 = vmax.xlane.f32.xlu1 %v1520_v13 }
 0x36d   : > { %v4472_v25 = vpop.permute.xlu0 %2133 }
 0x36e   : > { %1524 = vmax.xlane.f32.xlu0 %v1523_v8 }
 0x36f   : > { %v4474_v16 = vpop.permute.xlu1 %2180 }
 0x371   : > { %v4476_v29 = vpop.permute.xlu0 %2227 }
 0x373   : > { %v4480_v30 = vpop.permute.xlu1 %2274 }
 0x375   : > { %v1438_v37 = vpop.xlane.xlu0 %1437 }
 0x376   : > { %v1532_v55 = vsub.f32 %v4287_v2, %v1438_v37 }
 0x377   : > { %v1450_v38 = vpop.xlane.xlu1 %1449 }
 0x378   : > { %v1564_v61 = vmul.f32 1.442695, %v1532_v55  ;;  %v1536_v56 = vsub.f32 %v4298_v23, %v1450_v38 }
 0x379   : > { %v1453_v40 = vpop.xlane.xlu0 %1452 }
 0x37a   : > { %3490 = vpow2.f32 %v1564_v61  ;;  %v1572_v62 = vmul.f32 1.442695, %v1536_v56 }
 0x37b   : > { %v1441_v50 = vpop.xlane.xlu1 %1440 }
 0x37c   : > { %v1533_v34 = vsub.f32 %v4308_v28, %v1441_v50 }
 0x37d   : > { %2415 = vrot.lane.b32.xlu1 %v4151_v20, %s3822_s8  ;;  %v1444_v46 = vpop.xlane.xlu0 %1443  ;;  %v1537_v20 = vsub.f32 %v4305_v27, %v1453_v40 }
 0x37e   : > { %v1566_v60 = vmul.f32 1.442695, %v1533_v34  ;;  %v1534_v63 = vsub.f32 %v4313_v31, %v1444_v46 }
 0x37f   : > { %v1456_v3 = vpop.xlane.xlu1 %1455  ;;  %v1574_v59 = vmul.f32 1.442695, %v1537_v20 }
 0x380   : > { %3492 = vpow2.f32 %v1566_v60  ;;  %v1568_v2 = vmul.f32 1.442695, %v1534_v63  ;;  %v1538_v28 = vsub.f32 %v4324_v43, %v1456_v3 }
 0x381   : > { %v1447_v57 = vpop.xlane.xlu0 %1446  ;;  %3494 = vpow2.f32 %v1572_v62 }
 0x382   : > { %3496 = vpow2.f32 %v1574_v59  ;;  %v1576_v27 = vmul.f32 1.442695, %v1538_v28 }
 0x383   : > { %3498 = vpow2.f32 %v1568_v2 }
 0x384   : > { %2368 = vrot.lane.b32.xlu0 %v4144_v14, %s3822_s8  ;;  %v1535_v14 = vsub.f32 %v4327_v44, %v1447_v57  ;;  %v4492_v37 = vpop.eup %3490 }
 0x385   : > { %v1459_v13 = vpop.xlane.xlu0 %1458  ;;  %v1628_v44 = vsel %vm1435_vm3, %v4492_v37, 0.0 }
 0x386   : > { %v1570_v23 = vmul.f32 1.442695, %v1535_v14  ;;  %v1539_v8 = vsub.f32 %v4336_v48, %v1459_v13 }
 0x388   : > { %3500 = vpow2.f32 %v1570_v23  ;;  %v1578_v31 = vmul.f32 1.442695, %v1539_v8 }
 0x389   : > { %3502 = vpow2.f32 %v1576_v27 }
 0x38a   : > { %v4494_v38 = vpop.eup %3492  ;;  %3504 = vpow2.f32 %v1578_v31 }
 0x38b   : > { %v4498_v40 = vpop.eup %3494  ;;  %v1631_v43 = vsel %vm1435_vm3, %v4494_v38, 0.0 }
 0x38c   : > { %v4502_v48 = vpop.eup %3496  ;;  %v1640_v50 = vsel %vm1435_vm3, %v4498_v40, 0.0 }
 0x38d   : > { %v4506_v46 = vpop.eup %3498  ;;  %v1643_v55 = vsel %vm1435_vm3, %v4502_v48, 0.0 }
 0x38e   : > { %v1634_v61 = vsel %vm1435_vm3, %v4506_v46, 0.0 }
 0x392   : > { %v4510_v34 = vpop.eup %3500 }
 0x393   : > { %v4514_v56 = vpop.eup %3502  ;;  %v1637_v57 = vsel %vm1435_vm3, %v4510_v34, 0.0 }
 0x394   : > { %v4518_v20 = vpop.eup %3504  ;;  %v1646_v60 = vsel %vm1435_vm3, %v4514_v56, 0.0 }
 0x395   : > { %v1649_v62 = vsel %vm1435_vm3, %v4518_v20, 0.0 }
 0x3a1   : > { %1629 = vadd.xlane.f32.xlu1 %v1628_v44 }
 0x3a3   : > { %1632 = vadd.xlane.f32.xlu0 %v1631_v43 }
 0x3a5   : > { %1641 = vadd.xlane.f32.xlu1 %v1640_v50 }
 0x3a7   : > { %1644 = vadd.xlane.f32.xlu0 %v1643_v55 }
 0x3a9   : > { %1635 = vadd.xlane.f32.xlu1 %v1634_v61 }
 0x3ab   : > { %1638 = vadd.xlane.f32.xlu0 %v1637_v57 }
 0x3ad   : > { %1647 = vadd.xlane.f32.xlu1 %v1646_v60 }
 0x3af   : > { %1650 = vadd.xlane.f32.xlu0 %v1649_v62 }
 0x3cd   : > { %v1468_v63 = vpop.xlane.xlu1 %1467 }
 0x3ce   : > { %v1542_v3 = vsub.f32 %v4341_v1, %v1468_v63 }
 0x3cf   : > { %v1471_v59 = vpop.xlane.xlu0 %1470 }
 0x3d0   : > { %v1584_v14 = vmul.f32 1.442695, %v1542_v3  ;;  %v1543_v13 = vsub.f32 %v4346_v6, %v1471_v59 }
 0x3d1   : > { %v1462_v2 = vpop.xlane.xlu1 %1461 }
 0x3d2   : > { %3506 = vpow2.f32 %v1584_v14  ;;  %v1586_v28 = vmul.f32 1.442695, %v1543_v13  ;;  %v1540_v23 = vsub.f32 %v4349_v7, %v1462_v2 }
 0x3d3   : > { %v1465_v8 = vpop.xlane.xlu0 %1464 }
 0x3d4   : > { %3508 = vpow2.f32 %v1586_v28  ;;  %v1580_v27 = vmul.f32 1.442695, %v1540_v23  ;;  %v1541_v31 = vsub.f32 %v4354_v12, %v1465_v8 }
 0x3d5   : > { %v1480_v44 = vpop.xlane.xlu1 %1479 }
 0x3d6   : > { %3510 = vpow2.f32 %v1580_v27  ;;  %v1582_v43 = vmul.f32 1.442695, %v1541_v31  ;;  %v1546_v50 = vsub.f32 %v4361_v36, %v1480_v44 }
 0x3d7   : > { %v1483_v1 = vpop.xlane.xlu0 %1482 }
 0x3d8   : > { %3512 = vpow2.f32 %v1582_v43  ;;  %v1592_v55 = vmul.f32 1.442695, %v1546_v50  ;;  %v1547_v6 = vsub.f32 %v4366_v41, %v1483_v1 }
 0x3d9   : > { %v1474_v61 = vpop.xlane.xlu1 %1473 }
 0x3da   : > { %3514 = vpow2.f32 %v1592_v55  ;;  %v1594_v57 = vmul.f32 1.442695, %v1547_v6  ;;  %v1544_v7 = vsub.f32 %v4369_v42, %v1474_v61 }
 0x3db   : > { %v1477_v60 = vpop.xlane.xlu0 %1476 }
 0x3dc   : > { %v4531_v62 = vpop.eup %3506  ;;  %3516 = vpow2.f32 %v1594_v57  ;;  %v1588_v12 = vmul.f32 1.442695, %v1544_v7  ;;  %v1545_v63 = vsub.f32 %v4374_v51, %v1477_v60 }
 0x3dd   : > { %v1492_v3 = vpop.xlane.xlu1 %1491  ;;  %v1658_v36 = vsel %vm1435_vm3, %v4531_v62, 0.0 }
 0x3de   : > { %v4536_v59 = vpop.eup %3508  ;;  %3518 = vpow2.f32 %v1588_v12  ;;  %v1590_v41 = vmul.f32 1.442695, %v1545_v63  ;;  %v1550_v14 = vsub.f32 %v4381_v0, %v1492_v3  ;;  %1659 = vadd.xlane.f32.xlu1 %v1658_v36 }
 0x3df   : > { %v1495_v13 = vpop.xlane.xlu0 %1494  ;;  %v1661_v42 = vsel %vm1435_vm3, %v4536_v59, 0.0 }
 0x3e0   : > { %v4541_v2 = vpop.eup %3510  ;;  %3520 = vpow2.f32 %v1590_v41  ;;  %v1600_v28 = vmul.f32 1.442695, %v1550_v14  ;;  %v1551_v51 = vsub.f32 %v4386_v9, %v1495_v13  ;;  %1662 = vadd.xlane.f32.xlu0 %v1661_v42 }
 0x3e1   : > { %v1486_v23 = vpop.xlane.xlu1 %1485  ;;  %v1652_v8 = vsel %vm1435_vm3, %v4541_v2, 0.0 }
 0x3e2   : > { %v4546_v27 = vpop.eup %3512  ;;  %3522 = vpow2.f32 %v1600_v28  ;;  %v1602_v0 = vmul.f32 1.442695, %v1551_v51  ;;  %v1548_v31 = vsub.f32 %v4389_v10, %v1486_v23  ;;  %1653 = vadd.xlane.f32.xlu1 %v1652_v8 }
 0x3e3   : > { %v1489_v44 = vpop.xlane.xlu0 %1488  ;;  %v1655_v43 = vsel %vm1435_vm3, %v4546_v27, 0.0 }
 0x3e4   : > { %v4551_v50 = vpop.eup %3514  ;;  %3524 = vpow2.f32 %v1602_v0  ;;  %v1596_v9 = vmul.f32 1.442695, %v1548_v31  ;;  %v1549_v1 = vsub.f32 %v4394_v18, %v1489_v44  ;;  %1656 = vadd.xlane.f32.xlu0 %v1655_v43 }
 0x3e5   : > { %v1504_v55 = vpop.xlane.xlu1 %1503  ;;  %v1670_v6 = vsel %vm1435_vm3, %v4551_v50, 0.0 }
 0x3e6   : > { %v4556_v61 = vpop.eup %3516  ;;  %3526 = vpow2.f32 %v1596_v9  ;;  %v1598_v10 = vmul.f32 1.442695, %v1549_v1  ;;  %v1554_v57 = vsub.f32 %v4401_v47, %v1504_v55  ;;  %1671 = vadd.xlane.f32.xlu1 %v1670_v6 }
 0x3e7   : > { %v1507_v7 = vpop.xlane.xlu0 %1506  ;;  %v1673_v60 = vsel %vm1435_vm3, %v4556_v61, 0.0 }
 0x3e8   : > { %v4561_v12 = vpop.eup %3518  ;;  %3528 = vpow2.f32 %v1598_v10  ;;  %v1608_v18 = vmul.f32 1.442695, %v1554_v57  ;;  %v1555_v63 = vsub.f32 %v4406_v53, %v1507_v7  ;;  %1674 = vadd.xlane.f32.xlu0 %v1673_v60 }
 0x3e9   : > { %v1498_v3 = vpop.xlane.xlu1 %1497  ;;  %v1664_v36 = vsel %vm1435_vm3, %v4561_v12, 0.0 }
 0x3ea   : > { %v4566_v41 = vpop.eup %3520  ;;  %3530 = vpow2.f32 %v1608_v18  ;;  %v1610_v47 = vmul.f32 1.442695, %v1555_v63  ;;  %v1552_v14 = vsub.f32 %v4409_v54, %v1498_v3  ;;  %1665 = vadd.xlane.f32.xlu1 %v1664_v36 }
 0x3eb   : > { %v1501_v13 = vpop.xlane.xlu0 %1500  ;;  %v1667_v42 = vsel %vm1435_vm3, %v4566_v41, 0.0 }
 0x3ec   : > { %v4571_v28 = vpop.eup %3522  ;;  %3532 = vpow2.f32 %v1610_v47  ;;  %v1604_v53 = vmul.f32 1.442695, %v1552_v14  ;;  %v1553_v51 = vsub.f32 %v4414_v58, %v1501_v13  ;;  %1668 = vadd.xlane.f32.xlu0 %v1667_v42 }
 0x3ed   : > { %v1516_v23 = vpop.xlane.xlu1 %1515  ;;  %v1682_v8 = vsel %vm1435_vm3, %v4571_v28, 0.0 }
 0x3ee   : > { %v4576_v0 = vpop.eup %3524  ;;  %3534 = vpow2.f32 %v1604_v53  ;;  %v1606_v54 = vmul.f32 1.442695, %v1553_v51  ;;  %v1558_v31 = vsub.f32 %v4421_v22, %v1516_v23  ;;  %1683 = vadd.xlane.f32.xlu1 %v1682_v8 }
 0x3ef   : > { %v1519_v44 = vpop.xlane.xlu0 %1518  ;;  %v1685_v43 = vsel %vm1435_vm3, %v4576_v0, 0.0 }
 0x3f0   : > { %v4581_v9 = vpop.eup %3526  ;;  %3536 = vpow2.f32 %v1606_v54  ;;  %v1616_v58 = vmul.f32 1.442695, %v1558_v31  ;;  %v1559_v1 = vsub.f32 %v4426_v32, %v1519_v44  ;;  %1686 = vadd.xlane.f32.xlu0 %v1685_v43 }
 0x3f1   : > { %v1510_v55 = vpop.xlane.xlu1 %1509  ;;  %v1676_v6 = vsel %vm1435_vm3, %v4581_v9, 0.0 }
 0x3f2   : > { %v4586_v10 = vpop.eup %3528  ;;  %3538 = vpow2.f32 %v1616_v58  ;;  %v1618_v22 = vmul.f32 1.442695, %v1559_v1  ;;  %v1556_v57 = vsub.f32 %v4429_v35, %v1510_v55  ;;  %1677 = vadd.xlane.f32.xlu1 %v1676_v6 }
 0x3f3   : > { %v1513_v7 = vpop.xlane.xlu0 %1512  ;;  %v1679_v60 = vsel %vm1435_vm3, %v4586_v10, 0.0 }
 0x3f4   : > { %v4591_v18 = vpop.eup %3530  ;;  %3540 = vpow2.f32 %v1618_v22  ;;  %v1612_v32 = vmul.f32 1.442695, %v1556_v57  ;;  %v1557_v63 = vsub.f32 %v4434_v24, %v1513_v7  ;;  %1680 = vadd.xlane.f32.xlu0 %v1679_v60 }
 0x3f5   : > { %v1528_v3 = vpop.xlane.xlu1 %1527  ;;  %v1694_v36 = vsel %vm1435_vm3, %v4591_v18, 0.0 }
 0x3f6   : > { %v4596_v47 = vpop.eup %3532  ;;  %3542 = vpow2.f32 %v1612_v32  ;;  %v1614_v35 = vmul.f32 1.442695, %v1557_v63  ;;  %v1562_v14 = vsub.f32 %v4443_v17, %v1528_v3  ;;  %1695 = vadd.xlane.f32.xlu1 %v1694_v36 }
 0x3f7   : > { %v1531_v13 = vpop.xlane.xlu0 %1530  ;;  %v1697_v42 = vsel %vm1435_vm3, %v4596_v47, 0.0 }
 0x3f8   : > { %v4601_v53 = vpop.eup %3534  ;;  %3544 = vpow2.f32 %v1614_v35  ;;  %v1624_v24 = vmul.f32 1.442695, %v1562_v14  ;;  %v1563_v51 = vsub.f32 %v4448_v52, %v1531_v13  ;;  %1698 = vadd.xlane.f32.xlu0 %v1697_v42 }
 0x3f9   : > { %v1522_v23 = vpop.xlane.xlu1 %1521  ;;  %v1688_v8 = vsel %vm1435_vm3, %v4601_v53, 0.0 }
 0x3fa   : > { %v4606_v54 = vpop.eup %3536  ;;  %3546 = vpow2.f32 %v1624_v24  ;;  %v1626_v17 = vmul.f32 1.442695, %v1563_v51  ;;  %v1560_v31 = vsub.f32 %v4451_v4, %v1522_v23  ;;  %1689 = vadd.xlane.f32.xlu1 %v1688_v8 }
 0x3fb   : > { %v1525_v44 = vpop.xlane.xlu0 %1524  ;;  %v1691_v43 = vsel %vm1435_vm3, %v4606_v54, 0.0 }
 0x3fc   : > { %v4611_v58 = vpop.eup %3538  ;;  %3548 = vpow2.f32 %v1626_v17  ;;  %v1620_v52 = vmul.f32 1.442695, %v1560_v31  ;;  %v1561_v1 = vsub.f32 %v4458_v11, %v1525_v44  ;;  %1692 = vadd.xlane.f32.xlu0 %v1691_v43 }
 0x3fd   : > { %v1706_v55 = vsel %vm1435_vm3, %v4611_v58, 0.0  ;;  %v4648_v24 = vpop.permute.xlu1 %2415 }
 0x3fe   : > { %v4616_v6 = vpop.eup %3540  ;;  %3550 = vpow2.f32 %v1620_v52  ;;  %v1622_v22 = vmul.f32 1.442695, %v1561_v1  ;;  %1707 = vadd.xlane.f32.xlu1 %v1706_v55 }
 0x3ff   : > { %v1709_v4 = vsel %vm1435_vm3, %v4616_v6, 0.0  ;;  %v4650_v51 = vpop.permute.xlu0 %2368 }
 0x400   : > { %v4620_v57 = vpop.eup %3542  ;;  %3552 = vpow2.f32 %v1622_v22  ;;  %1710 = vadd.xlane.f32.xlu0 %v1709_v4 }
 0x401   : > { %v1700_v7 = vsel %vm1435_vm3, %v4620_v57, 0.0 }
 0x402   : > { %v4624_v11 = vpop.eup %3544  ;;  %1701 = vadd.xlane.f32.xlu1 %v1700_v7 }
 0x403   : > { %v1703_v60 = vsel %vm1435_vm3, %v4624_v11, 0.0 }
 0x404   : > { %v4628_v32 = vpop.eup %3546  ;;  %1704 = vadd.xlane.f32.xlu0 %v1703_v60 }
 0x405   : > { %v1718_v63 = vsel %vm1435_vm3, %v4628_v32, 0.0 }
 0x406   : > { %v4632_v3 = vpop.eup %3548  ;;  %1719 = vadd.xlane.f32.xlu1 %v1718_v63 }
 0x407   : > { %v1721_v36 = vsel %vm1435_vm3, %v4632_v3, 0.0 }
 0x408   : > { %v4636_v35 = vpop.eup %3550  ;;  %1722 = vadd.xlane.f32.xlu0 %v1721_v36 }
 0x409   : > { %v1712_v14 = vsel %vm1435_vm3, %v4636_v35, 0.0 }
 0x40a   : > { %v4640_v13 = vpop.eup %3552  ;;  %1713 = vadd.xlane.f32.xlu1 %v1712_v14 }
 0x40b   : > { %v1715_v42 = vsel %vm1435_vm3, %v4640_v13, 0.0 }
 0x40c   : > { %1716 = vadd.xlane.f32.xlu0 %v1715_v42 }
 0x41b   : > { %2509 = vrot.lane.b32.xlu1 %v4160_v26, %s3822_s8 }
 0x422   : > { %2462 = vrot.lane.b32.xlu0 %v4153_v21, %s3822_s8  ;;  %s4832_s8 = scalar_lea.hbm %s4889_s7, %s2977_s10 }
 0x42e   : > { %v1630_v23 = vpop.xlane.xlu1 %1629 }
 0x42f   : > { %3554 = vrcp.f32 %v1630_v23 }
 0x430   : > { %v1633_v8 = vpop.xlane.xlu0 %1632 }
 0x431   : > { %3556 = vrcp.f32 %v1633_v8 }
 0x432   : > { %v1642_v17 = vpop.xlane.xlu1 %1641 }
 0x434   : > { %v1645_v31 = vpop.xlane.xlu0 %1644 }
 0x435   : > { %3558 = vrcp.f32 %v1645_v31 }
 0x436   : > { %3560 = vrcp.f32 %v1642_v17  ;;  %v1636_v44 = vpop.xlane.xlu1 %1635 }
 0x437   : > { %3562 = vrcp.f32 %v1636_v44 }
 0x438   : > { %v1639_v43 = vpop.xlane.xlu0 %1638 }
 0x439   : > { %v3555_v52 = vpop.eup %3554  ;;  %3564 = vrcp.f32 %v1639_v43 }
 0x43a   : > { %v1756_v21 = vmul.f32 %v3555_v52, %v4492_v37  ;;  %v1648_v55 = vpop.xlane.xlu1 %1647 }
 0x43b   : > { %v3557_v26 = vpop.eup %3556 }
 0x43c   : > { %v1757_v1 = vmul.f32 %v3557_v26, %v4494_v38  ;;  %v1651_v22 = vpop.xlane.xlu0 %1650 }
 0x43d   : > { %3566 = vrcp.f32 %v1651_v22 }
 0x43e   : > { %v1788_v4 = vpack.c.bf16 %v1757_v1, %v1756_v21  ;;  %3568 = vrcp.f32 %v1648_v55 }
 0x43f   : > { %v3559_v7 = vpop.eup %3558 }
 0x440   : > { %v3561_v60 = vpop.eup %3560  ;;  %3165 = vmatmul.mubr.msk.bf16.vlgmr.msra.gmra.mrb[32].mxu0 %vm1435_vm3, %v1788_v4  ;;  %v1761_v36 = vmul.f32 %v3559_v7, %v4502_v48 }
 0x441   : > { %v3563_v63 = vpop.eup %3562  ;;  %3175 = vmatpush3.bf16.msra.mxu0 %v4436_v49  ;;  %3176 = vmatprep.mubr.msk.bf16.mxu0 %vm3819_vm1, %v3818_v39  ;;  %v1760_v38 = vmul.f32 %v3561_v60, %v4498_v40 }
 0x442   : > { %3186 = vmatprep.subr.bf16.mxu0 %v3818_v39  ;;  %v1758_v14 = vmul.f32 %v3563_v63, %v4506_v46 }
 0x443   : > { %v3565_v37 = vpop.eup %3564  ;;  %v1790_v8 = vpack.c.bf16 %v1761_v36, %v1760_v38 }
 0x444   : > { %v1759_v42 = vmul.f32 %v3565_v37, %v4510_v34 }
 0x446   : > { %v1789_v23 = vpack.c.bf16 %v1759_v42, %v1758_v14 }
 0x447   : > { %v3567_v17 = vpop.eup %3566 }
 0x448   : > { %3171 = vmatmul.mubr.msk.bf16.vlgmr.msra.gmra.mrb[40].mxu1 %vm1435_vm3, %v1789_v23  ;;  %3177 = vmatmul.mubr.msk.bf16.vlgmr.msra.gmra.mrb[36].mxu0 %vm1435_vm3, %v1790_v8  ;;  %v3569_v49 = vpop.eup %3568  ;;  %v1763_v48 = vmul.f32 %v3567_v17, %v4518_v20 }
 0x449   : > { %3181 = vmatpush3.bf16.msra.mxu1 %v4460_v33  ;;  %3187 = vmatpush3.bf16.msra.mxu0 %v4466_v45  ;;  %v1762_v40 = vmul.f32 %v3569_v49, %v4514_v56 }
 0x44a   : > { %3182 = vmatprep.mubr.msk.bf16.mxu1 %vm3819_vm1, %v3818_v39  ;;  %3192 = vmatprep.subr.bf16.mxu1 %v3818_v39 }
 0x44b   : > { %3188 = vmatprep.mubr.msk.bf16.mxu0 %vm3819_vm1, %v3818_v39  ;;  %3198 = vmatprep.subr.bf16.mxu0 %v3818_v39  ;;  %v1791_v46 = vpack.c.bf16 %v1763_v48, %v1762_v40 }
 0x450   : > { %3183 = vmatmul.mubr.msk.bf16.vlgmr.msra.gmra.mrb[44].mxu1 %vm1435_vm3, %v1791_v46 }
 0x451   : > { %3193 = vmatpush3.bf16.msra.mxu1 %v4468_v15  ;;  %3194 = vmatprep.mubr.msk.bf16.mxu1 %vm3819_vm1, %v3818_v39 }
 0x452   : > { %3204 = vmatprep.subr.bf16.mxu1 %v3818_v39 }
 0x46b   : > { %v1660_v33 = vpop.xlane.xlu1 %1659 }
 0x46c   : > { %3570 = vrcp.f32 %v1660_v33 }
 0x46d   : > { %v1663_v45 = vpop.xlane.xlu0 %1662 }
 0x46e   : > { %3572 = vrcp.f32 %v1663_v45 }
 0x46f   : > { %v1654_v34 = vpop.xlane.xlu1 %1653 }
 0x470   : > { %3574 = vrcp.f32 %v1654_v34 }
 0x471   : > { %v1657_v20 = vpop.xlane.xlu0 %1656 }
 0x472   : > { %3576 = vrcp.f32 %v1657_v20 }
 0x473   : > { %v1672_v31 = vpop.xlane.xlu1 %1671 }
 0x474   : > { %3578 = vrcp.f32 %v1672_v31 }
 0x475   : > { %v1675_v56 = vpop.xlane.xlu0 %1674 }
 0x476   : > { %v3571_v44 = vpop.eup %3570  ;;  %3580 = vrcp.f32 %v1675_v56 }
 0x477   : > { %v1666_v43 = vpop.xlane.xlu1 %1665  ;;  %v1766_v52 = vmul.f32 %v3571_v44, %v4531_v62 }
 0x478   : > { %v3573_v15 = vpop.eup %3572  ;;  %3582 = vrcp.f32 %v1666_v43 }
 0x479   : > { %v1767_v26 = vmul.f32 %v3573_v15, %v4536_v59  ;;  %v1669_v21 = vpop.xlane.xlu0 %1668 }
 0x47a   : > { %v3575_v1 = vpop.eup %3574  ;;  %3584 = vrcp.f32 %v1669_v21 }
 0x47b   : > { %v1684_v55 = vpop.xlane.xlu1 %1683  ;;  %v1793_v22 = vpack.c.bf16 %v1767_v26, %v1766_v52  ;;  %v1764_v7 = vmul.f32 %v3575_v1, %v4541_v2 }
 0x47c   : > { %v3577_v4 = vpop.eup %3576  ;;  %3586 = vrcp.f32 %v1684_v55 }
 0x47d   : > { %v1765_v60 = vmul.f32 %v3577_v4, %v4546_v27  ;;  %v1687_v63 = vpop.xlane.xlu0 %1686  ;;  %3195 = vmatmul.mubr.msk.bf16.vlgmr.msra.gmra.mrb[48].mxu1 %vm1435_vm3, %v1793_v22 }
 0x47e   : > { %v3579_v36 = vpop.eup %3578  ;;  %3588 = vrcp.f32 %v1687_v63  ;;  %3205 = vmatpush3.bf16.msra.mxu1 %v4472_v25  ;;  %3206 = vmatprep.mubr.msk.bf16.mxu1 %vm3819_vm1, %v3818_v39 }
 0x47f   : > { %v1678_v62 = vpop.xlane.xlu1 %1677  ;;  %v1792_v59 = vpack.c.bf16 %v1765_v60, %v1764_v7  ;;  %3216 = vmatprep.subr.bf16.mxu1 %v3818_v39  ;;  %v1770_v2 = vmul.f32 %v3579_v36, %v4551_v50 }
 0x480   : > { %v3581_v37 = vpop.eup %3580  ;;  %3590 = vrcp.f32 %v1678_v62 }
 0x481   : > { %v1771_v27 = vmul.f32 %v3581_v37, %v4556_v61  ;;  %v1681_v38 = vpop.xlane.xlu0 %1680  ;;  %3189 = vmatmul.mubr.msk.bf16.vlgmr.msra.gmra.mrb[40].mxu0 %vm1435_vm3, %v1792_v59 }
 0x482   : > { %v3583_v14 = vpop.eup %3582  ;;  %3592 = vrcp.f32 %v1681_v38  ;;  %3199 = vmatpush3.bf16.msra.mxu0 %v4470_v19  ;;  %3200 = vmatprep.mubr.msk.bf16.mxu0 %vm3819_vm1, %v3818_v39 }
 0x483   : > { %v1696_v25 = vpop.xlane.xlu1 %1695  ;;  %v1795_v42 = vpack.c.bf16 %v1771_v27, %v1770_v2  ;;  %3210 = vmatprep.subr.bf16.mxu0 %v3818_v39  ;;  %v1768_v50 = vmul.f32 %v3583_v14, %v4561_v12 }
 0x484   : > { %v3585_v23 = vpop.eup %3584  ;;  %3594 = vrcp.f32 %v1696_v25 }
 0x485   : > { %v1769_v61 = vmul.f32 %v3585_v23, %v4566_v41  ;;  %v1699_v8 = vpop.xlane.xlu0 %1698  ;;  %3207 = vmatmul.mubr.msk.bf16.vlgmr.msra.gmra.mrb[52].mxu1 %vm1435_vm3, %v1795_v42 }
 0x486   : > { %v3587_v17 = vpop.eup %3586  ;;  %3596 = vrcp.f32 %v1699_v8  ;;  %3217 = vmatpush3.bf16.msra.mxu1 %v4476_v29  ;;  %3218 = vmatprep.mubr.msk.bf16.mxu1 %vm3819_vm1, %v3818_v39 }
 0x487   : > { %v1690_v19 = vpop.xlane.xlu1 %1689  ;;  %v1794_v49 = vpack.c.bf16 %v1769_v61, %v1768_v50  ;;  %3228 = vmatprep.subr.bf16.mxu1 %v3818_v39  ;;  %v1774_v12 = vmul.f32 %v3587_v17, %v4571_v28 }
 0x488   : > { %v3589_v48 = vpop.eup %3588  ;;  %3598 = vrcp.f32 %v1690_v19 }
 0x489   : > { %v1775_v41 = vmul.f32 %v3589_v48, %v4576_v0  ;;  %v1693_v40 = vpop.xlane.xlu0 %1692  ;;  %3201 = vmatmul.mubr.msk.bf16.vlgmr.msra.gmra.mrb[44].mxu0 %vm1435_vm3, %v1794_v49 }
 0x48a   : > { %v3591_v46 = vpop.eup %3590  ;;  %3600 = vrcp.f32 %v1693_v40  ;;  %3211 = vmatpush3.bf16.msra.mxu0 %v4474_v16  ;;  %3212 = vmatprep.mubr.msk.bf16.mxu0 %vm3819_vm1, %v3818_v39 }
 0x48b   : > { %v1708_v29 = vpop.xlane.xlu1 %1707  ;;  %v1797_v33 = vpack.c.bf16 %v1775_v41, %v1774_v12  ;;  %3222 = vmatprep.subr.bf16.mxu0 %v3818_v39  ;;  %v1772_v28 = vmul.f32 %v3591_v46, %v4581_v9 }
 0x48c   : > { %v3593_v45 = vpop.eup %3592  ;;  %3602 = vrcp.f32 %v1708_v29 }
 0x48d   : > { %v1773_v0 = vmul.f32 %v3593_v45, %v4586_v10  ;;  %v1711_v34 = vpop.xlane.xlu0 %1710  ;;  %3219 = vmatmul.mubr.msk.bf16.vlgmr.msra.gmra.mrb[56].mxu1 %vm1435_vm3, %v1797_v33 }
 0x48e   : > { %v3595_v20 = vpop.eup %3594  ;;  %3604 = vrcp.f32 %v1711_v34  ;;  %3229 = vmatpush3.bf16.msra.mxu1 %v4453_v5  ;;  %3230 = vmatprep.mubr.msk.bf16.mxu1 %vm3819_vm1, %v3818_v39 }
 0x48f   : > { %v1702_v16 = vpop.xlane.xlu1 %1701  ;;  %v1796_v31 = vpack.c.bf16 %v1773_v0, %v1772_v28  ;;  %3240 = vmatprep.subr.bf16.mxu1 %v3818_v39  ;;  %v1778_v9 = vmul.f32 %v3595_v20, %v4591_v18 }
 0x490   : > { %v3597_v56 = vpop.eup %3596  ;;  %3606 = vrcp.f32 %v1702_v16 }
 0x491   : > { %v1779_v10 = vmul.f32 %v3597_v56, %v4596_v47  ;;  %v1705_v44 = vpop.xlane.xlu0 %1704  ;;  %3213 = vmatmul.mubr.msk.bf16.vlgmr.msra.gmra.mrb[48].mxu0 %vm1435_vm3, %v1796_v31 }
 0x492   : > { %v3599_v43 = vpop.eup %3598  ;;  %3608 = vrcp.f32 %v1705_v44  ;;  %3223 = vmatpush3.bf16.msra.mxu0 %v4480_v30  ;;  %3224 = vmatprep.mubr.msk.bf16.mxu0 %vm3819_vm1, %v3818_v39 }
 0x493   : > { %v1720_v5 = vpop.xlane.xlu1 %1719  ;;  %v1799_v15 = vpack.c.bf16 %v1779_v10, %v1778_v9  ;;  %3234 = vmatprep.subr.bf16.mxu0 %v3818_v39  ;;  %v1776_v18 = vmul.f32 %v3599_v43, %v4601_v53 }
 0x494   : > { %v3601_v52 = vpop.eup %3600  ;;  %3610 = vrcp.f32 %v1720_v5 }
 0x495   : > { %v1777_v47 = vmul.f32 %v3601_v52, %v4606_v54  ;;  %v1723_v26 = vpop.xlane.xlu0 %1722  ;;  %3231 = vmatmul.mubr.msk.bf16.vlgmr.msra.gmra.mrb[60].mxu1 %vm1435_vm3, %v1799_v15 }
 0x496   : > { %v3603_v21 = vpop.eup %3602  ;;  %3612 = vrcp.f32 %v1723_v26  ;;  %3241 = vmatpush3.bf16.msra.mxu1 %v4648_v24  ;;  %3242 = vmatprep.mubr.msk.bf16.mxu1 %vm3819_vm1, %v3818_v39 }
 0x497   : > { %v1714_v30 = vpop.xlane.xlu1 %1713  ;;  %v1798_v1 = vpack.c.bf16 %v1777_v47, %v1776_v18  ;;  %3252 = vmatprep.subr.bf16.mxu1 %v3818_v39  ;;  %v1782_v53 = vmul.f32 %v3603_v21, %v4611_v58 }
 0x498   : > { %v3605_v55 = vpop.eup %3604  ;;  %3614 = vrcp.f32 %v1714_v30 }
 0x499   : > { %v1783_v54 = vmul.f32 %v3605_v55, %v4616_v6  ;;  %v1717_v22 = vpop.xlane.xlu0 %1716  ;;  %3225 = vmatmul.mubr.msk.bf16.vlgmr.msra.gmra.mrb[52].mxu0 %vm1435_vm3, %v1798_v1 }
 0x49a   : > { %v3607_v4 = vpop.eup %3606  ;;  %3616 = vrcp.f32 %v1717_v22  ;;  %3235 = vmatpush3.bf16.msra.mxu0 %v4650_v51  ;;  %3236 = vmatprep.mubr.msk.bf16.mxu0 %vm3819_vm1, %v3818_v39 }
 0x49b   : > { %v2510_v24 = vpop.permute.xlu1 %2509  ;;  %v1801_v7 = vpack.c.bf16 %v1783_v54, %v1782_v53  ;;  %3246 = vmatprep.subr.bf16.mxu0 %v3818_v39  ;;  %v1780_v63 = vmul.f32 %v3607_v4, %v4620_v57 }
 0x49c   : > { %v3609_v60 = vpop.eup %3608 }
 0x49d   : > { %v1781_v58 = vmul.f32 %v3609_v60, %v4624_v11  ;;  %3243 = vmatmul.mubr.msk.bf16.vlgmr.msra.gmra.mrb[64].mxu1 %vm1435_vm3, %v1801_v7  ;;  %v2463_v37 = vpop.permute.xlu0 %2462 }
 0x49e   : > { %v3611_v6 = vpop.eup %3610  ;;  %3253 = vmatpush3.bf16.msra.mxu1 %v2510_v24  ;;  %3254 = vmatprep.mubr.msk.bf16.mxu1 %vm3819_vm1, %v3818_v39 }
 0x49f   : > { %v1800_v51 = vpack.c.bf16 %v1781_v58, %v1780_v63  ;;  %v1786_v62 = vmul.f32 %v3611_v6, %v4628_v32  ;;  %v3488_v58 = vld [vmem:[%s4887_s5] sm:$0xff]  }
 0x4a0   : > { %v3613_v36 = vpop.eup %3612 }
 0x4a1   : > { %v1787_v59 = vmul.f32 %v3613_v36, %v4632_v3  ;;  %3237 = vmatmul.mubr.msk.bf16.vlgmr.msra.gmra.mrb[56].mxu0 %vm1435_vm3, %v1800_v51 }
 0x4a2   : > { %v3615_v2 = vpop.eup %3614  ;;  %3247 = vmatpush3.bf16.msra.mxu0 %v2463_v37  ;;  %3248 = vmatprep.mubr.msk.bf16.mxu0 %vm3819_vm1, %v3818_v39  ;;  %v3489_v37 = vld [vmem:[%s4887_s5 + $0x8] sm:$0xff]  }
 0x4a3   : > { %v1803_v57 = vpack.c.bf16 %v1787_v59, %v1786_v62  ;;  %v1784_v27 = vmul.f32 %v3615_v2, %v4636_v35  ;;  %3258 = vmatprep.subr.bf16.mxu0 %v3488_v58 }
 0x4a4   : > { %v3617_v11 = vpop.eup %3616 }
 0x4a5   : > { %v1785_v38 = vmul.f32 %v3617_v11, %v4640_v13  ;;  %3255 = vmatmul.mubr.msk.bf16.vlgmr.msra.gmra.mrb[68].mxu1 %vm1435_vm3, %v1803_v57 }
 0x4a7   : > { %v1802_v14 = vpack.c.bf16 %v1785_v38, %v1784_v27 }
 0x4a9   : > { %3249 = vmatmul.mubr.msk.bf16.vlgmr.msra.gmra.mrb[60].mxu0 %vm1435_vm3, %v1802_v14 }
 0x4aa   : > { %3259 = vmatpush3.bf16.msra.mxu0 %v3488_v58 }
 0x4ab   : > { %3260 = vmatprep.subr.bf16.mxu0 %v3489_v37 }
 0x4ae   : > { %3261 = vmatpush3.bf16.msra.mxu0 %v3489_v37 }
 0x513   : > { %v4752_v32 = vpop.f32.mrb[32].mxu0 }
 0x514   : > { %v3166_v3 = vpop.f32.mrb[33].mxu0 }
 0x515   : > { %v4754_v25 = vpop.f32.mrb[34].mxu0 }
 0x516   : > { %v3167_v42 = vpop.f32.mrb[35].mxu0 }
 0x51b   : > { %v4756_v23 = vpop.f32.mrb[40].mxu1  ;;  %v4758_v39 = vpop.f32.mrb[36].mxu0 }
 0x51c   : > { %v3172_v50 = vpop.f32.mrb[41].mxu1  ;;  %v3178_v61 = vpop.f32.mrb[37].mxu0 }
 0x51d   : > { %v4760_v35 = vpop.f32.mrb[42].mxu1  ;;  %v4762_v13 = vpop.f32.mrb[38].mxu0 }
 0x51e   : > { %v3173_v8 = vpop.f32.mrb[43].mxu1  ;;  %v3179_v17 = vpop.f32.mrb[39].mxu0 }
 0x523   : > { %v4764_v19 = vpop.f32.mrb[44].mxu1 }
 0x524   : > { %v3184_v49 = vpop.f32.mrb[45].mxu1 }
 0x525   : > { %v4766_v48 = vpop.f32.mrb[46].mxu1 }
 0x526   : > { %v3185_v12 = vpop.f32.mrb[47].mxu1 }
 0x550   : > { %v2079_v41 = vpop.f32.mrb[48].mxu1 }
 0x551   : > { %v3196_v40 = vpop.f32.mrb[49].mxu1 }
 0x552   : > { %v2082_v46 = vpop.f32.mrb[50].mxu1 }
 0x553   : > { %v3426_v29 = vpack.i.bf16 %v2082_v46, %v2079_v41  ;;  %v3197_v33 = vpop.f32.mrb[51].mxu1 }
 0x554   : > { %v2032_v45 = vpop.f32.mrb[40].mxu0 }
 0x555   : > { %3427 = vrot.lane.b32.xlu1 %v3426_v29, %s3823_s23  ;;  %v3190_v28 = vpop.f32.mrb[41].mxu0 }
 0x556   : > { %v2035_v0 = vpop.f32.mrb[42].mxu0 }
 0x557   : > { %v3431_v34 = vpack.i.bf16 %v2035_v0, %v2032_v45  ;;  %v3191_v20 = vpop.f32.mrb[43].mxu0 }
 0x558   : > { %v2173_v16 = vpop.f32.mrb[52].mxu1 }
 0x559   : > { %3432 = vrot.lane.b32.xlu0 %v3431_v34, %s3823_s23  ;;  %v3208_v31 = vpop.f32.mrb[53].mxu1 }
 0x55a   : > { %v2176_v56 = vpop.f32.mrb[54].mxu1 }
 0x55b   : > { %v3436_v9 = vpack.i.bf16 %v2176_v56, %v2173_v16  ;;  %v3209_v10 = vpop.f32.mrb[55].mxu1 }
 0x55c   : > { %v2126_v44 = vpop.f32.mrb[44].mxu0 }
 0x55d   : > { %3437 = vrot.lane.b32.xlu1 %v3436_v9, %s3823_s23  ;;  %v3202_v43 = vpop.f32.mrb[45].mxu0 }
 0x55e   : > { %v2129_v5 = vpop.f32.mrb[46].mxu0 }
 0x55f   : > { %v3441_v15 = vpack.i.bf16 %v2129_v5, %v2126_v44  ;;  %v3203_v52 = vpop.f32.mrb[47].mxu0 }
 0x560   : > { %v2267_v18 = vpop.f32.mrb[56].mxu1 }
 0x561   : > { %3442 = vrot.lane.b32.xlu0 %v3441_v15, %s3823_s23  ;;  %v3220_v47 = vpop.f32.mrb[57].mxu1 }
 0x562   : > { %v2270_v26 = vpop.f32.mrb[58].mxu1 }
 0x563   : > { %v3446_v21 = vpack.i.bf16 %v2270_v26, %v2267_v18  ;;  %v3221_v30 = vpop.f32.mrb[59].mxu1 }
 0x564   : > { %v2220_v1 = vpop.f32.mrb[48].mxu0 }
 0x565   : > { %3447 = vrot.lane.b32.xlu1 %v3446_v21, %s3824_s16  ;;  %v3214_v55 = vpop.f32.mrb[49].mxu0 }
 0x566   : > { %v2223_v53 = vpop.f32.mrb[50].mxu0 }
 0x567   : > { %v3451_v54 = vpack.i.bf16 %v2223_v53, %v2220_v1  ;;  %v3215_v22 = vpop.f32.mrb[51].mxu0 }
 0x568   : > { %v2361_v4 = vpop.f32.mrb[60].mxu1 }
 0x569   : > { %3452 = vrot.lane.b32.xlu0 %v3451_v54, %s3824_s16  ;;  %v3232_v24 = vpop.f32.mrb[61].mxu1 }
 0x56a   : > { %v2364_v7 = vpop.f32.mrb[62].mxu1 }
 0x56b   : > { %v3471_v60 = vpack.i.bf16 %v2364_v7, %v2361_v4  ;;  %v3233_v63 = vpop.f32.mrb[63].mxu1 }
 0x56c   : > { %v2314_v6 = vpop.f32.mrb[52].mxu0 }
 0x56d   : > { %v3226_v51 = vpop.f32.mrb[53].mxu0 }
 0x56e   : > { %v2317_v36 = vpop.f32.mrb[54].mxu0 }
 0x56f   : > { %v3466_v62 = vpack.i.bf16 %v2317_v36, %v2314_v6  ;;  %v3227_v59 = vpop.f32.mrb[55].mxu0 }
 0x570   : > { %v2455_v2 = vpop.f32.mrb[64].mxu1 }
 0x571   : > { %v3244_v57 = vpop.f32.mrb[65].mxu1 }
 0x572   : > { %v2458_v11 = vpop.f32.mrb[66].mxu1 }
 0x573   : > { %v3456_v27 = vpack.i.bf16 %v2458_v11, %v2455_v2  ;;  %v3245_v38 = vpop.f32.mrb[67].mxu1 }
 0x574   : > { %v2408_v14 = vpop.f32.mrb[56].mxu0 }
 0x575   : > { %3457 = vrot.lane.b32.xlu1 %v3456_v27, %s3825_s1  ;;  %v3238_v3 = vpop.f32.mrb[57].mxu0 }
 0x576   : > { %v2411_v42 = vpop.f32.mrb[58].mxu0 }
 0x577   : > { %v3461_v50 = vpack.i.bf16 %v2411_v42, %v2408_v14  ;;  %v3239_v61 = vpop.f32.mrb[59].mxu0 }
 0x578   : > { %v2549_v8 = vpop.f32.mrb[68].mxu1 }
 0x579   : > { %3472 = vrot.lane.b32.xlu1 %v3471_v60, %s3824_s16  ;;  %3462 = vrot.lane.b32.xlu0 %v3461_v50, %s3825_s1  ;;  %v3256_v17 = vpop.f32.mrb[69].mxu1 }
 0x57a   : > { %v2552_v49 = vpop.f32.mrb[70].mxu1 }
 0x57b   : > { %v3481_v12 = vpack.i.bf16 %v2552_v49, %v2549_v8  ;;  %v3257_v41 = vpop.f32.mrb[71].mxu1 }
 0x57c   : > { %v2502_v40 = vpop.f32.mrb[60].mxu0 }
 0x57d   : > { %3467 = vrot.lane.b32.xlu0 %v3466_v62, %s3824_s16  ;;  %v3250_v46 = vpop.f32.mrb[61].mxu0  ;;  %3482 = vrot.lane.b32.xlu1 %v3481_v12, %s3825_s1  ;;  %s3732_s16 = scalar_lea.vmem %s4835_s17, 1024 }
 0x57e   : > { %v2505_v29 = vpop.f32.mrb[62].mxu0  ;;  %p3733_p10 = scmp.ne.s32.totalorder %s4835_s17, %s3732_s16  ;;  %p3740_p2 = scmp.lt.s32.totalorder %s3738_s19, %s3732_s16 }
 0x57f   : > { %v3476_v33 = vpack.i.bf16 %v2505_v29, %v2502_v40  ;;  %v3251_v45 = vpop.f32.mrb[63].mxu0 }
 0x580   : > { %p3734_p3 = pnand %p3733_p10, %p4016_p5  ;;  %p3741_p1 = por %p3740_p2, %p3739_p12 }
 0x581   : > { %3477 = vrot.lane.b32.xlu0 %v3476_v33, %s3825_s1 }
 0x582   : > { %p3735_p7 = pneg %p3734_p3 }
 0x584   : > { %p3742_p4 = pnand %p3741_p1, %p3735_p7 }
 0x5c7   : > { %v3428_v28 = vpop.permute.xlu1 %3427 }
 0x5c8   : > { %v3430_v31 = vunpack.i.h.bf16 %v3428_v28  ;;  %v3429_v56 = vunpack.i.l.bf16 %v3428_v28 }
 0x5ca   : > { %v2655_v43 = vsel %vm557_vm2, %v4760_v35, %v3430_v31  ;;  %v2654_v5 = vsel %vm557_vm2, %v4756_v23, %v3429_v56 }
 0x5cb   : > { %v3433_v0 = vpop.permute.xlu0 %3432 }
 0x5cc   : > { %v3435_v52 = vunpack.i.h.bf16 %v3433_v0  ;;  %v3434_v18 = vunpack.i.l.bf16 %v3433_v0 }
 0x5ce   : > { %v2653_v7 = vsel %vm557_vm2, %v4754_v25, %v3435_v52  ;;  %v2652_v60 = vsel %vm557_vm2, %v4752_v32, %v3434_v18 }
 0x5cf   : > { %v3438_v34 = vpop.permute.xlu1 %3437 }
 0x5d0   : > { %v3440_v35 = vunpack.i.h.bf16 %v3438_v34  ;;  %v3439_v22 = vunpack.i.l.bf16 %v3438_v34 }
 0x5d2   : > { %v2659_v2 = vsel %vm557_vm2, %v4766_v48, %v3440_v35  ;;  %v2658_v25 = vsel %vm557_vm2, %v4764_v19, %v3439_v22 }
 0x5d3   : > { %v3443_v20 = vpop.permute.xlu0 %3442 }
 0x5d4   : > { %v3445_v27 = vunpack.i.h.bf16 %v3443_v20  ;;  %v3444_v38 = vunpack.i.l.bf16 %v3443_v20 }
 0x5d6   : > { %v2657_v12 = vsel %vm557_vm2, %v4762_v13, %v3445_v27  ;;  %v2656_v41 = vsel %vm557_vm2, %v4758_v39, %v3444_v38  ;;  %v2961_v39 = vld [vmem:[%s4888_s6] ss:$0 sm:$0xff] }
 0x5d7   : > { %v3448_v16 = vpop.permute.xlu1 %3447 }
 0x5d8   : > { %v3450_v9 = vunpack.i.h.bf16 %v3448_v16  ;;  %v3449_v10 = vunpack.i.l.bf16 %v3448_v16 }
 0x5da   : > { %v2662_v21 = vsel %vm1435_vm3, %v2654_v5, %v3449_v10  ;;  %v2663_v30 = vsel %vm1435_vm3, %v2655_v43, %v3450_v9 }
 0x5db   : > { %v3453_v44 = vpop.permute.xlu0 %3452 }
 0x5dc   : > { %v3455_v1 = vunpack.i.h.bf16 %v3453_v44  ;;  %v3454_v55 = vunpack.i.l.bf16 %v3453_v44 }
 0x5de   : > { %v2661_v6 = vsel %vm1435_vm3, %v2653_v7, %v3455_v1  ;;  %v2660_v51 = vsel %vm1435_vm3, %v2652_v60, %v3454_v55 }
 0x5e7   : > { %v3458_v15 = vpop.permute.xlu1 %3457 }
 0x5e8   : > { %v3460_v47 = vunpack.i.h.bf16 %v3458_v15  ;;  %v3459_v26 = vunpack.i.l.bf16 %v3458_v15 }
 0x5ea   : > { %v2671_v53 = vsel %vm2668_vm4, %v2662_v21, %v3459_v26  ;;  %v2672_v54 = vsel %vm2668_vm4, %v2663_v30, %v3460_v47 }
 0x5eb   : > { %v2678_v4 = vpack.c.bf16 %v2672_v54, %v2671_v53  ;;  %v3463_v23 = vpop.permute.xlu0 %3462  ;;  %v3473_v24 = vpop.permute.xlu1 %3472 }
 0x5ec   : > { %v3465_v63 = vunpack.i.h.bf16 %v3463_v23  ;;  %v3464_v58 = vunpack.i.l.bf16 %v3463_v23  ;;  %v3475_v36 = vunpack.i.h.bf16 %v3473_v24  ;;  %v3474_v62 = vunpack.i.l.bf16 %v3473_v24 }
 0x5ee   : > { %v2670_v59 = vsel %vm2668_vm4, %v2661_v6, %v3465_v63  ;;  %v2669_v37 = vsel %vm2668_vm4, %v2660_v51, %v3464_v58  ;;  %v2666_v42 = vsel %vm1435_vm3, %v2658_v25, %v3474_v62  ;;  %v2667_v50 = vsel %vm1435_vm3, %v2659_v2, %v3475_v36 }
 0x5ef   : > { %v2677_v57 = vpack.c.bf16 %v2670_v59, %v2669_v37  ;;  %v3468_v32 = vpop.permute.xlu0 %3467  ;;  %v3483_v11 = vpop.permute.xlu1 %3482 }
 0x5f0   : > { %v3485_v14 = vunpack.i.h.bf16 %v3483_v11  ;;  %v3484_v3 = vunpack.i.l.bf16 %v3483_v11  ;;  %v3470_v61 = vunpack.i.h.bf16 %v3468_v32  ;;  %v3469_v8 = vunpack.i.l.bf16 %v3468_v32 }
 0x5f1   : > { %3262 = vmatprep.mubr.msk.bf16.mxu0 %vm380_vm0, %v2677_v57 }
 0x5f2   : > { %v2675_v48 = vsel %vm2668_vm4, %v2666_v42, %v3484_v3  ;;  %v2676_v17 = vsel %vm2668_vm4, %v2667_v50, %v3485_v14  ;;  %3263 = vmatmul.mubr.msk.bf16.vlgmr.msra.gmra.mrb[64].mxu0 %vm380_vm0, %v2678_v4  ;;  %v2665_v29 = vsel %vm1435_vm3, %v2657_v12, %v3470_v61  ;;  %v2664_v33 = vsel %vm1435_vm3, %v2656_v41, %v3469_v8 }
 0x5f3   : > { %v2680_v19 = vpack.c.bf16 %v2676_v17, %v2675_v48  ;;  %v3478_v49 = vpop.permute.xlu0 %3477 }
 0x5f4   : > { %v3480_v40 = vunpack.i.h.bf16 %v3478_v49  ;;  %v3479_v46 = vunpack.i.l.bf16 %v3478_v49 }
 0x5f6   : > { %v2674_v45 = vsel %vm2668_vm4, %v2665_v29, %v3480_v40  ;;  %v2673_v28 = vsel %vm2668_vm4, %v2664_v33, %v3479_v46 }
 0x5f7   : > { %v2679_v0 = vpack.c.bf16 %v2674_v45, %v2673_v28 }
 0x5f9   : > { %3266 = vmatprep.mubr.msk.bf16.mxu0 %vm380_vm0, %v2679_v0 }
 0x5fa   : > { %3267 = vmatmul.mubr.msk.bf16.gmra.mrb[68].mxu0 %vm380_vm0, %v2680_v19 }
 0x6c5   : > { %v3264_v13 = vpop.f32.mrb[64].mxu0 }
 0x6c6   : > { %v2759_v34 = vadd.f32 %v3264_v13, %v2961_v39  ;;  %v2750_v20 = vpop.f32.mrb[65].mxu0 }
 0x6c7   : > { %v2751_v16 = vadd.f32 %v2961_v39, %v2750_v20  ;;  %v3265_v31 = vpop.f32.mrb[66].mxu0 }
 0x6c8   : > { %2783 = vst.msk [vmem:[%s341_s29 + $0x10] sm:$0xff] %vm380_vm0, %v2759_v34  ;;  %v2762_v56 = vadd.f32 %v3265_v31, %v2961_v39  ;;  %v2753_v9 = vpop.f32.mrb[67].mxu0 }
 0x6c9   : > { %2781 = vst.msk [vmem:[%s341_s29] sm:$0xff] %vm380_vm0, %v2751_v16  ;;  %v2754_v10 = vadd.f32 %v2961_v39, %v2753_v9 }
 0x6ca   : > { %2784 = vst.msk [vmem:[%s341_s29 + $0x18] sm:$0xff] %vm380_vm0, %v2762_v56 }
 0x6cb   : > { %2782 = vst.msk [vmem:[%s341_s29 + $0x8] sm:$0xff] %vm380_vm0, %v2754_v10 }
 0x6cd   : > { %v3268_v44 = vpop.f32.mrb[68].mxu0 }
 0x6ce   : > { %v2775_v43 = vadd.f32 %v3268_v44, %v2961_v39  ;;  %v2766_v5 = vpop.f32.mrb[69].mxu0 }
 0x6cf   : > { %v2767_v15 = vadd.f32 %v2961_v39, %v2766_v5  ;;  %v3269_v52 = vpop.f32.mrb[70].mxu0 }
 0x6d0   : > { %2787 = vst.msk [vmem:[%s341_s29 + $0x30] sm:$0xff] %vm380_vm0, %v2775_v43  ;;  %v2778_v18 = vadd.f32 %v3269_v52, %v2961_v39  ;;  %v2769_v47 = vpop.f32.mrb[71].mxu0 }
 0x6d1   : > { %2785 = vst.msk [vmem:[%s341_s29 + $0x20] sm:$0xff] %vm380_vm0, %v2767_v15  ;;  %v2770_v26 = vadd.f32 %v2961_v39, %v2769_v47 }
 0x6d2   : > { %2788 = vst.msk [vmem:[%s341_s29 + $0x38] sm:$0xff] %vm380_vm0, %v2778_v18 }
 0x6d3   : > { %2786 = vst.msk [vmem:[%s341_s29 + $0x28] sm:$0xff] %vm380_vm0, %v2770_v26 }
 0x6d4   : > { %3745 = shalt.err (!%p3742_p4)
}
 0x6d5   : > { %s3746_s22 = scalar_lea.hbm %s4832_s8, 1024  ;;  %s3750_s9 = scalar_lea.hbm %s4889_s7, 2048 }
 0x6d6   : > { %p3747_p9 = scmp.ne.s32.totalorder %s4832_s8, %s3746_s22  ;;  %p3751_p8 = scmp.lt.u32.totalorder %s4832_s8, %s4889_s7 }
 0x6d7   : > { %p3752_p13 = scmp.lt.u32.totalorder %s3750_s9, %s3746_s22  ;;  %p3754_p10 = scmp.lt.u32.totalorder %s3746_s22, %s4832_s8 }
 0x6d8   : > { %p3748_p0 = pnand %p3747_p9, %p4016_p5 }
 0x6d9   : > { %p3753_p6 = por %p3752_p13, %p3751_p8 }
 0x6da   : > { %p3749_p11 = pneg %p3748_p0 }
 0x6db   : > { %p3755_p3 = por %p3754_p10, %p3753_p6 }
 0x6dd   : > { %p3756_p7 = pnand %p3755_p3, %p3749_p11 }
 0x6df   : > { %3759 = shalt.err (!%p3756_p7)
}
 0x6e0   : > { %s3827_s21 = smov 128  }
 0x6e1   : > { %3288 = dma.vmem_to_hbm [thread:$0]  (%p4016_p5), %s4835_s17, 1024, %s4832_s8, %s2790_s28, %s3827_s21, %s3827_s21, %s3823_s23  }
 0x6e2 PF: > { %s4911_s14 = sld [smem:[#allocation15_spill]]  ;;  %s2819_s16 = sand.u32 1, %s3794_s24  }
 0x6e3   : > { %p4913_p2 = scmp.ge.s32.totalorder %s3806_s27, 2  ;;  %s2820_s11 = scalar_lea.sflag [#allocation4], %s2819_s16 }
 0x6e8   : > { %p4912_p12 = scmp.ne.s32.totalorder %s4911_s14, 0 }
 0x6ea   : > { %p3305_p1 = pnand %p4913_p2, %p4912_p12 }
 0x6ec   : > { %3789 = dma.done.wait (!%p3305_p1), %s2820_s11, 1024  }
 0x6ed   : > { %3791 = vsyncadd (!%p3305_p1), %s2820_s11, 4294966272  ;;  %p22_p4 = scmp.ge.s32.totalorder %s3981_s18, 4   ;;  %s4914_s24 = smov %s3798_s25 }
 0x6ee   : > { %s4915_s25 = smov %s3802_s26  ;;  %s4916_s26 = smov %s4012_s13 }
 0x6ef   : > { %s4917_s27 = smov %s3981_s18  ;;  %24 = sbr.rel (!%p22_p4) target bundleno = 9 (0x9), region = 105 }
 0x6f6   :  { %2825 = vsyncpa [#allocation3], 1 }
 0x6f7   :  { %2827 = vsyncpa [#allocation3 + $0x1], 1 }
 0x6f8   :  { %2828 = vsyncpa [#allocation6], 1 }
 0x6f9   :  { %2829 = vsyncpa [#allocation9], 1 }
 0x6fa   :  { %2830 = vsyncpa [#allocation4], 1 }
 0x6fb   :  { %2832 = vsyncpa [#allocation4 + $0x1], 1 }

</bundles_post_ra>
